<compile_context>
chip_gen: v5e
topology: v5e:2x2
jax: 0.10.0
libtpu: 0.0.40
codegen_flags: <defaults>
</compile_context>

<pallas_src>
import jax
import jax.numpy as jnp
from jax.experimental import pallas as pl
from jax.experimental.pallas import tpu as pltpu


# --------------------------------- the kernel --------------------------------

def decoder_block_kernel(
    q_ref, x1_ref, x2_ref,
    # self-attention (timm Attention: qkv_bias=False, qk_norm=False, proj bias=True)
    w_q_sa_ref, w_k_sa_ref, w_v_sa_ref, w_proj1_ref, b_proj1_ref,
    ln1_g_ref, ln1_b_ref,
    # cross-attention (qkv_bias=False, qk_norm=False, proj bias=False)
    w_q_ca_ref, w_k_ca_ref, w_v_ca_ref, w_proj2_ref,
    ln2_g_ref, ln2_b_ref,
    # MLP (fc1 -> GELU(tanh) -> fc2)
    w_fc1_ref, b_fc1_ref, w_fc2_ref, b_fc2_ref,
    ln3_g_ref, ln3_b_ref,
    out_ref,
):
    cdt = w_q_sa_ref.dtype                 # MXU input dtype (bfloat16)
    num_heads = w_q_sa_ref.shape[0]

    def broadcast_heads(x):
        # (N, C) -> (H, N, C) in the MXU dtype; all heads read the same tokens.
        return jnp.broadcast_to(x.astype(cdt)[None], (num_heads,) + x.shape)

    def head_proj(xb, w_ref):
        # (H, N, C) @ (H, C, d) -> (H, N, d); bf16 inputs, f32 accumulation.
        return jnp.einsum("hnc,hcd->hnd", xb, w_ref[...],
                          preferred_element_type=jnp.float32).astype(cdt)

    def attention(qh, kh, vh):
        # qh: (H, N1, d), kh/vh: (H, N2, d), all bf16.  Returns (H, N1, d) f32.
        s = jnp.einsum("hqd,hkd->hqk", qh, kh,
                       preferred_element_type=jnp.float32)
        s = s - jnp.max(s, axis=-1, keepdims=True)
        p = jnp.exp(s)                                            # f32 softmax
        inv = pl.reciprocal(jnp.sum(p, axis=-1, keepdims=True), approx=True)
        o = jnp.einsum("hqk,hkd->hqd", p.astype(cdt), vh,
                       preferred_element_type=jnp.float32)
        return o * inv                    # fold 1/denominator into the PV result

    def merge_heads(o, w_proj_ref):
        # (H, N1, d) @ (H, d, C) summed over heads -> (N1, C); equivalent to the
        # "transpose + reshape + proj" of the PyTorch code, with no lane concat.
        po = jnp.einsum("hnd,hdc->hnc", o.astype(cdt), w_proj_ref[...],
                        preferred_element_type=jnp.float32)
        return jnp.sum(po, axis=0)

    def layernorm(x, g_ref, b_ref, eps=1e-5):
        mu = jnp.mean(x, axis=-1, keepdims=True)
        var = jnp.mean((x - mu) ** 2, axis=-1, keepdims=True)
        return (x - mu) * jax.lax.rsqrt(var + eps) * g_ref[...] + b_ref[...]

    def gelu_tanh(x):
        # matches torch.nn.GELU(approximate='tanh')
        c = 0.7978845608028654             # sqrt(2 / pi)
        return 0.5 * x * (1.0 + jnp.tanh(c * (x + 0.044715 * x * x * x)))

    # Residual stream stays in f32; activations are cast to bf16 only at MXU inputs.
    q = q_ref[0].astype(jnp.float32)                          # (N1, C)

    # ---- self-attention ; q = LN1(q + proj(MHA(q))) ----
    qb = broadcast_heads(q)
    o = attention(head_proj(qb, w_q_sa_ref),                  # scale folded in w_q_sa
                  head_proj(qb, w_k_sa_ref),
                  head_proj(qb, w_v_sa_ref))
    o = merge_heads(o, w_proj1_ref) + b_proj1_ref[...]
    q = layernorm(q + o, ln1_g_ref, ln1_b_ref)

    # ---- cross-attention over concat(x1, x2) ; q = LN2(q + out) ----
    feats = jnp.concatenate([x1_ref[0], x2_ref[0]], axis=0)   # (N2, C), VMEM concat
    fb = broadcast_heads(feats)
    o = attention(head_proj(broadcast_heads(q), w_q_ca_ref),  # scale folded in w_q_ca
                  head_proj(fb, w_k_ca_ref),
                  head_proj(fb, w_v_ca_ref))
    o = merge_heads(o, w_proj2_ref)                           # cross-attn proj: no bias
    q = layernorm(q + o, ln2_g_ref, ln2_b_ref)

    # ---- MLP (fc1 -> GELU(tanh) -> fc2) ; q = LN3(q + mlp(q)) ----
    h = jnp.dot(q.astype(cdt), w_fc1_ref[...],
                preferred_element_type=jnp.float32) + b_fc1_ref[...]
    h = gelu_tanh(h)
    m = jnp.dot(h.astype(cdt), w_fc2_ref[...],
                preferred_element_type=jnp.float32) + b_fc2_ref[...]
    q = layernorm(q + m, ln3_g_ref, ln3_b_ref)

    out_ref[0] = q.astype(out_ref.dtype)


# --------------------------------- the wrapper --------------------------------

_PACKED_PARAM_ORDER = (
    "w_q_sa", "w_k_sa", "w_v_sa", "w_proj1", "b_proj1", "ln1_g", "ln1_b",
    "w_q_ca", "w_k_ca", "w_v_ca", "w_proj2", "ln2_g", "ln2_b",
    "w_fc1", "b_fc1", "w_fc2", "b_fc2", "ln3_g", "ln3_b",
)


def _const_block_spec(arr):
    # Grid-invariant index map: the block is fetched once and reused across the
    # whole batch grid.  At production channel widths (C >= 512) the large
    # matrices (w_fc1/w_fc2/qkv) should additionally be single-buffered or
    # streamed over their hidden dimension to respect the v7x 64 MiB VMEM.
    zeros = (0,) * arr.ndim
    return pl.BlockSpec(arr.shape, lambda b: zeros)


def concatenate_decoder_block(q, x1, x2, c, packed_params, num_heads):
    """Forward pass of ConcatenateDecoderBlock.  `c` is unused (as in PyTorch)."""
    del c, num_heads            # num_heads is baked into the packed weight shapes
    B, N1, C = q.shape
    n_x1, n_x2 = x1.shape[1], x2.shape[1]

    weight_args = [packed_params[name] for name in _PACKED_PARAM_ORDER]
    weight_specs = [_const_block_spec(w) for w in weight_args]

    return pl.pallas_call(
        decoder_block_kernel,
        out_shape=jax.ShapeDtypeStruct((B, N1, C), q.dtype),
        grid_spec=pltpu.PrefetchScalarGridSpec(
            num_scalar_prefetch=0,
            grid=(B,),
            in_specs=[
                pl.BlockSpec((1, N1, C), lambda b: (b, 0, 0)),
                pl.BlockSpec((1, n_x1, C), lambda b: (b, 0, 0)),
                pl.BlockSpec((1, n_x2, C), lambda b: (b, 0, 0)),
            ] + weight_specs,
            out_specs=pl.BlockSpec((1, N1, C), lambda b: (b, 0, 0)),
        ),
        compiler_params=pltpu.CompilerParams(
            dimension_semantics=("parallel",),     # megacore: shard batch on v7x
            vmem_limit_bytes=64 * 1024 * 1024,
        ),
    )(q, x1, x2, *weight_args)


# ------------------------------ parameter handling -----------------------------

def init_params(key, hidden_size, mlp_ratio=4.0):
    """PyTorch-equivalent f32 parameters (x @ W orientation, (1, C) biases)."""
    C = hidden_size
    H = int(C * mlp_ratio)
    ks = jax.random.split(key, 10)

    def lin(k, fan_in, fan_out):
        bound = 1.0 / (fan_in ** 0.5)
        return jax.random.uniform(k, (fan_in, fan_out), jnp.float32, -bound, bound)

    def bias(k, fan_in, fan_out):
        bound = 1.0 / (fan_in ** 0.5)
        return jax.random.uniform(k, (1, fan_out), jnp.float32, -bound, bound)

    return {
        # self-attention (Attention: qkv bias=False, proj bias=True)
        "w_qkv": lin(ks[0], C, 3 * C),
        "w_proj1": lin(ks[1], C, C),
        "b_proj1": bias(ks[2], C, C),
        "ln1_g": jnp.ones((1, C), jnp.float32),
        "ln1_b": jnp.zeros((1, C), jnp.float32),
        # cross-attention (q_mat / kv_mat / proj all bias=False)
        "w_q": lin(ks[3], C, C),
        "w_kv": lin(ks[4], C, 2 * C),
        "w_proj2": lin(ks[5], C, C),
        "ln2_g": jnp.ones((1, C), jnp.float32),
        "ln2_b": jnp.zeros((1, C), jnp.float32),
        # MLP (fc1/fc2 bias=True)
        "w_fc1": lin(ks[6], C, H),
        "b_fc1": bias(ks[7], C, H),
        "w_fc2": lin(ks[8], H, C),
        "b_fc2": bias(ks[9], H, C),
        "ln3_g": jnp.ones((1, C), jnp.float32),
        "ln3_b": jnp.zeros((1, C), jnp.float32),
    }


def pack_params(params, num_heads, compute_dtype=jnp.bfloat16):
    """Repack PyTorch-layout params into the kernel's head-major bf16 layout.

    Done once, outside the kernel and the hot path: projection weights become
    (H, C, head_dim) / (H, head_dim, C) so the kernel never splits or
    re-concatenates head channels, the attention scale is folded into the
    Q-projection weights, and matmul weights are cast to bf16.  Biases and
    LayerNorm parameters stay f32 (applied to the f32 accumulators)."""
    C = params["w_qkv"].shape[0]
    H = num_heads
    d = C // H
    scale = d ** -0.5

    def in_proj(w):      # (C, H*d) -> (H, C, d); output channels are head-major
        return jnp.transpose(w.reshape(C, H, d), (1, 0, 2)).astype(compute_dtype)

    def out_proj(w):     # (H*d, C) -> (H, d, C); input channels are head-major
        return w.reshape(H, d, C).astype(compute_dtype)

    f32 = lambda x: x.astype(jnp.float32)
    w_qkv, w_kv = params["w_qkv"], params["w_kv"]

    return {
        # self-attention
        "w_q_sa": in_proj(w_qkv[:, :C] * scale),
        "w_k_sa": in_proj(w_qkv[:, C:2 * C]),
        "w_v_sa": in_proj(w_qkv[:, 2 * C:]),
        "w_proj1": out_proj(params["w_proj1"]),
        "b_proj1": f32(params["b_proj1"]),
        "ln1_g": f32(params["ln1_g"]), "ln1_b": f32(params["ln1_b"]),
        # cross-attention
        "w_q_ca": in_proj(params["w_q"] * scale),
        "w_k_ca": in_proj(w_kv[:, :C]),
        "w_v_ca": in_proj(w_kv[:, C:]),
        "w_proj2": out_proj(params["w_proj2"]),
        "ln2_g": f32(params["ln2_g"]), "ln2_b": f32(params["ln2_b"]),
        # MLP
        "w_fc1": params["w_fc1"].astype(compute_dtype),
        "b_fc1": f32(params["b_fc1"]),
        "w_fc2": params["w_fc2"].astype(compute_dtype),
        "b_fc2": f32(params["b_fc2"]),
        "ln3_g": f32(params["ln3_g"]), "ln3_b": f32(params["ln3_b"]),
    }


# ------------------------------ pure-JAX reference -----------------------------

def reference_forward(q, x1, x2, params, num_heads):
    """f32 reference mirroring the PyTorch module (eval mode)."""
    B, N1, C = q.shape
    H = num_heads
    d = C // H
    scale = d ** -0.5

    def split_heads(x, w):                 # (B, N, C) @ (C, C) -> (B, H, N, d)
        y = jnp.einsum("bnc,cm->bnm", x, w)
        return y.reshape(B, -1, H, d).transpose(0, 2, 1, 3)

    def mha(qx, kvx, w_q, w_k, w_v):
        qh = split_heads(qx, w_q) * scale
        kh = split_heads(kvx, w_k)
        vh = split_heads(kvx, w_v)
        p = jax.nn.softmax(jnp.einsum("bhqd,bhkd->bhqk", qh, kh), axis=-1)
        o = jnp.einsum("bhqk,bhkd->bhqd", p, vh)
        return o.transpose(0, 2, 1, 3).reshape(B, -1, C)

    def ln(x, g, b, eps=1e-5):
        mu = x.mean(-1, keepdims=True)
        var = ((x - mu) ** 2).mean(-1, keepdims=True)
        return (x - mu) * jax.lax.rsqrt(var + eps) * g + b

    def gelu_tanh(x):
        c = 0.7978845608028654
        return 0.5 * x * (1.0 + jnp.tanh(c * (x + 0.044715 * x ** 3)))

    w_qkv = params["w_qkv"]
    o = mha(q, q, w_qkv[:, :C], w_qkv[:, C:2 * C], w_qkv[:, 2 * C:])
    o = o @ params["w_proj1"] + params["b_proj1"]
    q = ln(q + o, params["ln1_g"], params["ln1_b"])

    feats = jnp.concatenate([x1, x2], axis=1)
    w_kv = params["w_kv"]
    o = mha(q, feats, params["w_q"], w_kv[:, :C], w_kv[:, C:])
    o = o @ params["w_proj2"]
    q = ln(q + o, params["ln2_g"], params["ln2_b"])

    h = gelu_tanh(q @ params["w_fc1"] + params["b_fc1"])
    q = ln(q + h @ params["w_fc2"] + params["b_fc2"],
           params["ln3_g"], params["ln3_b"])
    return q


# ------------------------------------ main ------------------------------------

if __name__ == "__main__":
    hidden_size = 32
    num_heads = 4
    B, N1, NX = 2, 8, 8      # query tokens / tokens per feature map

    key = jax.random.PRNGKey(0)
    k_q, k_x1, k_x2, k_c, k_p = jax.random.split(key, 5)

    q = jax.random.normal(k_q, (B, N1, hidden_size), jnp.float32)
    x1 = jax.random.normal(k_x1, (B, NX, hidden_size), jnp.float32)
    x2 = jax.random.normal(k_x2, (B, NX, hidden_size), jnp.float32)
    c = jax.random.normal(k_c, (B, N1, hidden_size), jnp.float32)  # unused by forward

    params = init_params(k_p, hidden_size, mlp_ratio=4.0)
    packed = pack_params(params, num_heads)

    out = concatenate_decoder_block(q, x1, x2, c, packed, num_heads)
    out = jax.block_until_ready(out)
    assert out.shape == (B, N1, hidden_size)

    # Tolerance covers bf16 weight/activation quantization (accumulation is f32).
    ref = reference_forward(q, x1, x2, params, num_heads)
    err = float(jnp.max(jnp.abs(out - ref)))
    assert err < 0.2, f"kernel/reference mismatch: max abs err {err}"

    print("KERNEL_OK")
</pallas_src>

<mosaic_0001>
module attributes {stable_mosaic.version = 11 : i64} {
  func.func @decoder_block_kernel(%arg0: i32, %arg1: memref<1x8x32xf32, #tpu.memory_space<vmem>>, %arg2: memref<1x8x32xf32, #tpu.memory_space<vmem>>, %arg3: memref<1x8x32xf32, #tpu.memory_space<vmem>>, %arg4: memref<4x32x8xbf16, #tpu.memory_space<vmem>>, %arg5: memref<4x32x8xbf16, #tpu.memory_space<vmem>>, %arg6: memref<4x32x8xbf16, #tpu.memory_space<vmem>>, %arg7: memref<4x8x32xbf16, #tpu.memory_space<vmem>>, %arg8: memref<1x32xf32, #tpu.memory_space<vmem>>, %arg9: memref<1x32xf32, #tpu.memory_space<vmem>>, %arg10: memref<1x32xf32, #tpu.memory_space<vmem>>, %arg11: memref<4x32x8xbf16, #tpu.memory_space<vmem>>, %arg12: memref<4x32x8xbf16, #tpu.memory_space<vmem>>, %arg13: memref<4x32x8xbf16, #tpu.memory_space<vmem>>, %arg14: memref<4x8x32xbf16, #tpu.memory_space<vmem>>, %arg15: memref<1x32xf32, #tpu.memory_space<vmem>>, %arg16: memref<1x32xf32, #tpu.memory_space<vmem>>, %arg17: memref<32x128xbf16, #tpu.memory_space<vmem>>, %arg18: memref<1x128xf32, #tpu.memory_space<vmem>>, %arg19: memref<128x32xbf16, #tpu.memory_space<vmem>>, %arg20: memref<1x32xf32, #tpu.memory_space<vmem>>, %arg21: memref<1x32xf32, #tpu.memory_space<vmem>>, %arg22: memref<1x32xf32, #tpu.memory_space<vmem>>, %arg23: memref<1x8x32xf32, #tpu.memory_space<vmem>>) attributes {dimension_semantics = [#tpu.dimension_semantics<parallel>], iteration_bounds = array<i64: 2>, scalar_prefetch = 0 : i64, scratch_operands = 0 : i64, tpu.core_type = #tpu.core_type<tc>, window_params = [{transform_indices = @transform_0, window_bounds = array<i64: 1, 8, 32>}, {transform_indices = @transform_1, window_bounds = array<i64: 1, 8, 32>}, {transform_indices = @transform_2, window_bounds = array<i64: 1, 8, 32>}, {pipeline_mode = #tpu.pipeline_mode<synchronous>, transform_indices = @transform_3, window_bounds = array<i64: 4, 32, 8>}, {pipeline_mode = #tpu.pipeline_mode<synchronous>, transform_indices = @transform_4, window_bounds = array<i64: 4, 32, 8>}, {pipeline_mode = #tpu.pipeline_mode<synchronous>, transform_indices = @transform_5, window_bounds = array<i64: 4, 32, 8>}, {pipeline_mode = #tpu.pipeline_mode<synchronous>, transform_indices = @transform_6, window_bounds = array<i64: 4, 8, 32>}, {pipeline_mode = #tpu.pipeline_mode<synchronous>, transform_indices = @transform_7, window_bounds = array<i64: 1, 32>}, {pipeline_mode = #tpu.pipeline_mode<synchronous>, transform_indices = @transform_8, window_bounds = array<i64: 1, 32>}, {pipeline_mode = #tpu.pipeline_mode<synchronous>, transform_indices = @transform_9, window_bounds = array<i64: 1, 32>}, {pipeline_mode = #tpu.pipeline_mode<synchronous>, transform_indices = @transform_10, window_bounds = array<i64: 4, 32, 8>}, {pipeline_mode = #tpu.pipeline_mode<synchronous>, transform_indices = @transform_11, window_bounds = array<i64: 4, 32, 8>}, {pipeline_mode = #tpu.pipeline_mode<synchronous>, transform_indices = @transform_12, window_bounds = array<i64: 4, 32, 8>}, {pipeline_mode = #tpu.pipeline_mode<synchronous>, transform_indices = @transform_13, window_bounds = array<i64: 4, 8, 32>}, {pipeline_mode = #tpu.pipeline_mode<synchronous>, transform_indices = @transform_14, window_bounds = array<i64: 1, 32>}, {pipeline_mode = #tpu.pipeline_mode<synchronous>, transform_indices = @transform_15, window_bounds = array<i64: 1, 32>}, {pipeline_mode = #tpu.pipeline_mode<synchronous>, transform_indices = @transform_16, window_bounds = array<i64: 32, 128>}, {pipeline_mode = #tpu.pipeline_mode<synchronous>, transform_indices = @transform_17, window_bounds = array<i64: 1, 128>}, {pipeline_mode = #tpu.pipeline_mode<synchronous>, transform_indices = @transform_18, window_bounds = array<i64: 128, 32>}, {pipeline_mode = #tpu.pipeline_mode<synchronous>, transform_indices = @transform_19, window_bounds = array<i64: 1, 32>}, {pipeline_mode = #tpu.pipeline_mode<synchronous>, transform_indices = @transform_20, window_bounds = array<i64: 1, 32>}, {pipeline_mode = #tpu.pipeline_mode<synchronous>, transform_indices = @transform_21, window_bounds = array<i64: 1, 32>}, {transform_indices = @transform_22, window_bounds = array<i64: 1, 8, 32>}]} {
    %c0 = arith.constant 0 : index
    %c0_0 = arith.constant 0 : index
    %c0_1 = arith.constant 0 : index
    %0 = vector.load %arg1[%c0, %c0_0, %c0_1] : memref<1x8x32xf32, #tpu.memory_space<vmem>>, vector<1x8x32xf32>
    %1 = vector.shape_cast %0 : vector<1x8x32xf32> to vector<8x32xf32>
    %2 = arith.truncf %1 : vector<8x32xf32> to vector<8x32xbf16>
    %3 = vector.shape_cast %2 : vector<8x32xbf16> to vector<1x8x32xbf16>
    %4 = vector.shape_cast %3 : vector<1x8x32xbf16> to vector<1x8x32xbf16>
    %5 = vector.broadcast %4 : vector<1x8x32xbf16> to vector<4x8x32xbf16>
    %c0_2 = arith.constant 0 : index
    %c0_3 = arith.constant 0 : index
    %c0_4 = arith.constant 0 : index
    %6 = vector.load %arg4[%c0_2, %c0_3, %c0_4] : memref<4x32x8xbf16, #tpu.memory_space<vmem>>, vector<4x32x8xbf16>
    "tpu.trace_start"() <{level = 10 : i32, message = "hnc,hcd->hnd"}> : () -> ()
    %cst = arith.constant dense<0.000000e+00> : vector<4x8x8xf32>
    %7 = tpu.matmul %5, %6, %cst {dimension_numbers = #tpu.dot_dimension_numbers<[2], [1], [1], [2], [0, 0, 0, 1, 1, 2], [0], [0]>} : vector<4x8x32xbf16>, vector<4x32x8xbf16>, vector<4x8x8xf32> -> vector<4x8x8xf32>
    "tpu.trace_stop"() : () -> ()
    %8 = arith.truncf %7 : vector<4x8x8xf32> to vector<4x8x8xbf16>
    %c0_5 = arith.constant 0 : index
    %c0_6 = arith.constant 0 : index
    %c0_7 = arith.constant 0 : index
    %9 = vector.load %arg5[%c0_5, %c0_6, %c0_7] : memref<4x32x8xbf16, #tpu.memory_space<vmem>>, vector<4x32x8xbf16>
    "tpu.trace_start"() <{level = 10 : i32, message = "hnc,hcd->hnd"}> : () -> ()
    %cst_8 = arith.constant dense<0.000000e+00> : vector<4x8x8xf32>
    %10 = tpu.matmul %5, %9, %cst_8 {dimension_numbers = #tpu.dot_dimension_numbers<[2], [1], [1], [2], [0, 0, 0, 1, 1, 2], [0], [0]>} : vector<4x8x32xbf16>, vector<4x32x8xbf16>, vector<4x8x8xf32> -> vector<4x8x8xf32>
    "tpu.trace_stop"() : () -> ()
    %11 = arith.truncf %10 : vector<4x8x8xf32> to vector<4x8x8xbf16>
    %c0_9 = arith.constant 0 : index
    %c0_10 = arith.constant 0 : index
    %c0_11 = arith.constant 0 : index
    %12 = vector.load %arg6[%c0_9, %c0_10, %c0_11] : memref<4x32x8xbf16, #tpu.memory_space<vmem>>, vector<4x32x8xbf16>
    "tpu.trace_start"() <{level = 10 : i32, message = "hnc,hcd->hnd"}> : () -> ()
    %cst_12 = arith.constant dense<0.000000e+00> : vector<4x8x8xf32>
    %13 = tpu.matmul %5, %12, %cst_12 {dimension_numbers = #tpu.dot_dimension_numbers<[2], [1], [1], [2], [0, 0, 0, 1, 1, 2], [0], [0]>} : vector<4x8x32xbf16>, vector<4x32x8xbf16>, vector<4x8x8xf32> -> vector<4x8x8xf32>
    "tpu.trace_stop"() : () -> ()
    %14 = arith.truncf %13 : vector<4x8x8xf32> to vector<4x8x8xbf16>
    "tpu.trace_start"() <{level = 10 : i32, message = "hqd,hkd->hqk"}> : () -> ()
    %cst_13 = arith.constant dense<0.000000e+00> : vector<4x8x8xf32>
    %15 = tpu.matmul %8, %11, %cst_13 {dimension_numbers = #tpu.dot_dimension_numbers<[2], [2], [1], [1], [0, 0, 0, 1, 1, 1], [0], [0]>} : vector<4x8x8xbf16>, vector<4x8x8xbf16>, vector<4x8x8xf32> -> vector<4x8x8xf32>
    "tpu.trace_stop"() : () -> ()
    %cst_14 = arith.constant dense<0xFF800000> : vector<4x8xf32>
    %16 = vector.multi_reduction <maximumf>, %15, %cst_14 [2] : vector<4x8x8xf32> to vector<4x8xf32>
    %17 = vector.shape_cast %16 : vector<4x8xf32> to vector<4x8x1xf32>
    %18 = vector.broadcast %17 : vector<4x8x1xf32> to vector<4x8x8xf32>
    %19 = arith.subf %15, %18 : vector<4x8x8xf32>
    %20 = math.exp %19 : vector<4x8x8xf32>
    %cst_15 = arith.constant dense<0.000000e+00> : vector<4x8xf32>
    %21 = vector.multi_reduction <add>, %20, %cst_15 [2] : vector<4x8x8xf32> to vector<4x8xf32>
    %22 = vector.shape_cast %21 : vector<4x8xf32> to vector<4x8x1xf32>
    %23 = tpu.reciprocal %22 {approx = true} : vector<4x8x1xf32> -> vector<4x8x1xf32>
    %24 = arith.truncf %20 : vector<4x8x8xf32> to vector<4x8x8xbf16>
    "tpu.trace_start"() <{level = 10 : i32, message = "hqk,hkd->hqd"}> : () -> ()
    %cst_16 = arith.constant dense<0.000000e+00> : vector<4x8x8xf32>
    %25 = tpu.matmul %24, %14, %cst_16 {dimension_numbers = #tpu.dot_dimension_numbers<[2], [1], [1], [2], [0, 0, 0, 1, 1, 2], [0], [0]>} : vector<4x8x8xbf16>, vector<4x8x8xbf16>, vector<4x8x8xf32> -> vector<4x8x8xf32>
    "tpu.trace_stop"() : () -> ()
    %26 = vector.broadcast %23 : vector<4x8x1xf32> to vector<4x8x8xf32>
    %27 = arith.mulf %25, %26 : vector<4x8x8xf32>
    %28 = arith.truncf %27 : vector<4x8x8xf32> to vector<4x8x8xbf16>
    %c0_17 = arith.constant 0 : index
    %c0_18 = arith.constant 0 : index
    %c0_19 = arith.constant 0 : index
    %29 = vector.load %arg7[%c0_17, %c0_18, %c0_19] : memref<4x8x32xbf16, #tpu.memory_space<vmem>>, vector<4x8x32xbf16>
    "tpu.trace_start"() <{level = 10 : i32, message = "hnd,hdc->hnc"}> : () -> ()
    %cst_20 = arith.constant dense<0.000000e+00> : vector<4x8x32xf32>
    %30 = tpu.matmul %28, %29, %cst_20 {dimension_numbers = #tpu.dot_dimension_numbers<[2], [1], [1], [2], [0, 0, 0, 1, 1, 2], [0], [0]>} : vector<4x8x8xbf16>, vector<4x8x32xbf16>, vector<4x8x32xf32> -> vector<4x8x32xf32>
    "tpu.trace_stop"() : () -> ()
    %cst_21 = arith.constant dense<0.000000e+00> : vector<8x32xf32>
    %31 = vector.multi_reduction <add>, %30, %cst_21 [0] : vector<4x8x32xf32> to vector<8x32xf32>
    %c0_22 = arith.constant 0 : index
    %c0_23 = arith.constant 0 : index
    %32 = vector.load %arg8[%c0_22, %c0_23] : memref<1x32xf32, #tpu.memory_space<vmem>>, vector<1x32xf32>
    %33 = vector.broadcast %32 : vector<1x32xf32> to vector<8x32xf32>
    %34 = arith.addf %31, %33 : vector<8x32xf32>
    %35 = arith.addf %1, %34 : vector<8x32xf32>
    %cst_24 = arith.constant dense<0.000000e+00> : vector<8xf32>
    %36 = vector.multi_reduction <add>, %35, %cst_24 [1] : vector<8x32xf32> to vector<8xf32>
    %37 = vector.shape_cast %36 : vector<8xf32> to vector<8x1xf32>
    %cst_25 = arith.constant 3.200000e+01 : f32
    %38 = vector.broadcast %cst_25 : f32 to vector<8x1xf32>
    %39 = arith.divf %37, %38 : vector<8x1xf32>
    %40 = vector.broadcast %39 : vector<8x1xf32> to vector<8x32xf32>
    %41 = arith.subf %35, %40 : vector<8x32xf32>
    %42 = arith.mulf %41, %41 : vector<8x32xf32>
    %cst_26 = arith.constant dense<0.000000e+00> : vector<8xf32>
    %43 = vector.multi_reduction <add>, %42, %cst_26 [1] : vector<8x32xf32> to vector<8xf32>
    %44 = vector.shape_cast %43 : vector<8xf32> to vector<8x1xf32>
    %cst_27 = arith.constant 3.200000e+01 : f32
    %45 = vector.broadcast %cst_27 : f32 to vector<8x1xf32>
    %46 = arith.divf %44, %45 : vector<8x1xf32>
    %47 = vector.broadcast %39 : vector<8x1xf32> to vector<8x32xf32>
    %48 = arith.subf %35, %47 : vector<8x32xf32>
    %cst_28 = arith.constant 9.99999974E-6 : f32
    %49 = vector.broadcast %cst_28 : f32 to vector<8x1xf32>
    %50 = arith.addf %46, %49 : vector<8x1xf32>
    %51 = math.rsqrt %50 : vector<8x1xf32>
    %52 = vector.broadcast %51 : vector<8x1xf32> to vector<8x32xf32>
    %53 = arith.mulf %48, %52 : vector<8x32xf32>
    %c0_29 = arith.constant 0 : index
    %c0_30 = arith.constant 0 : index
    %54 = vector.load %arg9[%c0_29, %c0_30] : memref<1x32xf32, #tpu.memory_space<vmem>>, vector<1x32xf32>
    %55 = vector.broadcast %54 : vector<1x32xf32> to vector<8x32xf32>
    %56 = arith.mulf %53, %55 : vector<8x32xf32>
    %c0_31 = arith.constant 0 : index
    %c0_32 = arith.constant 0 : index
    %57 = vector.load %arg10[%c0_31, %c0_32] : memref<1x32xf32, #tpu.memory_space<vmem>>, vector<1x32xf32>
    %58 = vector.broadcast %57 : vector<1x32xf32> to vector<8x32xf32>
    %59 = arith.addf %56, %58 : vector<8x32xf32>
    %c0_33 = arith.constant 0 : index
    %c0_34 = arith.constant 0 : index
    %c0_35 = arith.constant 0 : index
    %60 = vector.load %arg2[%c0_33, %c0_34, %c0_35] : memref<1x8x32xf32, #tpu.memory_space<vmem>>, vector<1x8x32xf32>
    %61 = vector.shape_cast %60 : vector<1x8x32xf32> to vector<8x32xf32>
    %c0_36 = arith.constant 0 : index
    %c0_37 = arith.constant 0 : index
    %c0_38 = arith.constant 0 : index
    %62 = vector.load %arg3[%c0_36, %c0_37, %c0_38] : memref<1x8x32xf32, #tpu.memory_space<vmem>>, vector<1x8x32xf32>
    %63 = vector.shape_cast %62 : vector<1x8x32xf32> to vector<8x32xf32>
    %64 = tpu.concatenate %61, %63 in 0 : vector<8x32xf32>, vector<8x32xf32> -> vector<16x32xf32>
    %65 = arith.truncf %64 : vector<16x32xf32> to vector<16x32xbf16>
    %66 = vector.shape_cast %65 : vector<16x32xbf16> to vector<1x16x32xbf16>
    %67 = vector.shape_cast %66 : vector<1x16x32xbf16> to vector<1x16x32xbf16>
    %68 = vector.broadcast %67 : vector<1x16x32xbf16> to vector<4x16x32xbf16>
    %69 = arith.truncf %59 : vector<8x32xf32> to vector<8x32xbf16>
    %70 = vector.shape_cast %69 : vector<8x32xbf16> to vector<1x8x32xbf16>
    %71 = vector.shape_cast %70 : vector<1x8x32xbf16> to vector<1x8x32xbf16>
    %72 = vector.broadcast %71 : vector<1x8x32xbf16> to vector<4x8x32xbf16>
    %c0_39 = arith.constant 0 : index
    %c0_40 = arith.constant 0 : index
    %c0_41 = arith.constant 0 : index
    %73 = vector.load %arg11[%c0_39, %c0_40, %c0_41] : memref<4x32x8xbf16, #tpu.memory_space<vmem>>, vector<4x32x8xbf16>
    "tpu.trace_start"() <{level = 10 : i32, message = "hnc,hcd->hnd"}> : () -> ()
    %cst_42 = arith.constant dense<0.000000e+00> : vector<4x8x8xf32>
    %74 = tpu.matmul %72, %73, %cst_42 {dimension_numbers = #tpu.dot_dimension_numbers<[2], [1], [1], [2], [0, 0, 0, 1, 1, 2], [0], [0]>} : vector<4x8x32xbf16>, vector<4x32x8xbf16>, vector<4x8x8xf32> -> vector<4x8x8xf32>
    "tpu.trace_stop"() : () -> ()
    %75 = arith.truncf %74 : vector<4x8x8xf32> to vector<4x8x8xbf16>
    %c0_43 = arith.constant 0 : index
    %c0_44 = arith.constant 0 : index
    %c0_45 = arith.constant 0 : index
    %76 = vector.load %arg12[%c0_43, %c0_44, %c0_45] : memref<4x32x8xbf16, #tpu.memory_space<vmem>>, vector<4x32x8xbf16>
    "tpu.trace_start"() <{level = 10 : i32, message = "hnc,hcd->hnd"}> : () -> ()
    %cst_46 = arith.constant dense<0.000000e+00> : vector<4x16x8xf32>
    %77 = tpu.matmul %68, %76, %cst_46 {dimension_numbers = #tpu.dot_dimension_numbers<[2], [1], [1], [2], [0, 0, 0, 1, 1, 2], [0], [0]>} : vector<4x16x32xbf16>, vector<4x32x8xbf16>, vector<4x16x8xf32> -> vector<4x16x8xf32>
    "tpu.trace_stop"() : () -> ()
    %78 = arith.truncf %77 : vector<4x16x8xf32> to vector<4x16x8xbf16>
    %c0_47 = arith.constant 0 : index
    %c0_48 = arith.constant 0 : index
    %c0_49 = arith.constant 0 : index
    %79 = vector.load %arg13[%c0_47, %c0_48, %c0_49] : memref<4x32x8xbf16, #tpu.memory_space<vmem>>, vector<4x32x8xbf16>
    "tpu.trace_start"() <{level = 10 : i32, message = "hnc,hcd->hnd"}> : () -> ()
    %cst_50 = arith.constant dense<0.000000e+00> : vector<4x16x8xf32>
    %80 = tpu.matmul %68, %79, %cst_50 {dimension_numbers = #tpu.dot_dimension_numbers<[2], [1], [1], [2], [0, 0, 0, 1, 1, 2], [0], [0]>} : vector<4x16x32xbf16>, vector<4x32x8xbf16>, vector<4x16x8xf32> -> vector<4x16x8xf32>
    "tpu.trace_stop"() : () -> ()
    %81 = arith.truncf %80 : vector<4x16x8xf32> to vector<4x16x8xbf16>
    "tpu.trace_start"() <{level = 10 : i32, message = "hqd,hkd->hqk"}> : () -> ()
    %cst_51 = arith.constant dense<0.000000e+00> : vector<4x8x16xf32>
    %82 = tpu.matmul %75, %78, %cst_51 {dimension_numbers = #tpu.dot_dimension_numbers<[2], [2], [1], [1], [0, 0, 0, 1, 1, 1], [0], [0]>} : vector<4x8x8xbf16>, vector<4x16x8xbf16>, vector<4x8x16xf32> -> vector<4x8x16xf32>
    "tpu.trace_stop"() : () -> ()
    %cst_52 = arith.constant dense<0xFF800000> : vector<4x8xf32>
    %83 = vector.multi_reduction <maximumf>, %82, %cst_52 [2] : vector<4x8x16xf32> to vector<4x8xf32>
    %84 = vector.shape_cast %83 : vector<4x8xf32> to vector<4x8x1xf32>
    %85 = vector.broadcast %84 : vector<4x8x1xf32> to vector<4x8x16xf32>
    %86 = arith.subf %82, %85 : vector<4x8x16xf32>
    %87 = math.exp %86 : vector<4x8x16xf32>
    %cst_53 = arith.constant dense<0.000000e+00> : vector<4x8xf32>
    %88 = vector.multi_reduction <add>, %87, %cst_53 [2] : vector<4x8x16xf32> to vector<4x8xf32>
    %89 = vector.shape_cast %88 : vector<4x8xf32> to vector<4x8x1xf32>
    %90 = tpu.reciprocal %89 {approx = true} : vector<4x8x1xf32> -> vector<4x8x1xf32>
    %91 = arith.truncf %87 : vector<4x8x16xf32> to vector<4x8x16xbf16>
    "tpu.trace_start"() <{level = 10 : i32, message = "hqk,hkd->hqd"}> : () -> ()
    %cst_54 = arith.constant dense<0.000000e+00> : vector<4x8x8xf32>
    %92 = tpu.matmul %91, %81, %cst_54 {dimension_numbers = #tpu.dot_dimension_numbers<[2], [1], [1], [2], [0, 0, 0, 1, 1, 2], [0], [0]>} : vector<4x8x16xbf16>, vector<4x16x8xbf16>, vector<4x8x8xf32> -> vector<4x8x8xf32>
    "tpu.trace_stop"() : () -> ()
    %93 = vector.broadcast %90 : vector<4x8x1xf32> to vector<4x8x8xf32>
    %94 = arith.mulf %92, %93 : vector<4x8x8xf32>
    %95 = arith.truncf %94 : vector<4x8x8xf32> to vector<4x8x8xbf16>
    %c0_55 = arith.constant 0 : index
    %c0_56 = arith.constant 0 : index
    %c0_57 = arith.constant 0 : index
    %96 = vector.load %arg14[%c0_55, %c0_56, %c0_57] : memref<4x8x32xbf16, #tpu.memory_space<vmem>>, vector<4x8x32xbf16>
    "tpu.trace_start"() <{level = 10 : i32, message = "hnd,hdc->hnc"}> : () -> ()
    %cst_58 = arith.constant dense<0.000000e+00> : vector<4x8x32xf32>
    %97 = tpu.matmul %95, %96, %cst_58 {dimension_numbers = #tpu.dot_dimension_numbers<[2], [1], [1], [2], [0, 0, 0, 1, 1, 2], [0], [0]>} : vector<4x8x8xbf16>, vector<4x8x32xbf16>, vector<4x8x32xf32> -> vector<4x8x32xf32>
    "tpu.trace_stop"() : () -> ()
    %cst_59 = arith.constant dense<0.000000e+00> : vector<8x32xf32>
    %98 = vector.multi_reduction <add>, %97, %cst_59 [0] : vector<4x8x32xf32> to vector<8x32xf32>
    %99 = arith.addf %59, %98 : vector<8x32xf32>
    %cst_60 = arith.constant dense<0.000000e+00> : vector<8xf32>
    %100 = vector.multi_reduction <add>, %99, %cst_60 [1] : vector<8x32xf32> to vector<8xf32>
    %101 = vector.shape_cast %100 : vector<8xf32> to vector<8x1xf32>
    %cst_61 = arith.constant 3.200000e+01 : f32
    %102 = vector.broadcast %cst_61 : f32 to vector<8x1xf32>
    %103 = arith.divf %101, %102 : vector<8x1xf32>
    %104 = vector.broadcast %103 : vector<8x1xf32> to vector<8x32xf32>
    %105 = arith.subf %99, %104 : vector<8x32xf32>
    %106 = arith.mulf %105, %105 : vector<8x32xf32>
    %cst_62 = arith.constant dense<0.000000e+00> : vector<8xf32>
    %107 = vector.multi_reduction <add>, %106, %cst_62 [1] : vector<8x32xf32> to vector<8xf32>
    %108 = vector.shape_cast %107 : vector<8xf32> to vector<8x1xf32>
    %cst_63 = arith.constant 3.200000e+01 : f32
    %109 = vector.broadcast %cst_63 : f32 to vector<8x1xf32>
    %110 = arith.divf %108, %109 : vector<8x1xf32>
    %111 = vector.broadcast %103 : vector<8x1xf32> to vector<8x32xf32>
    %112 = arith.subf %99, %111 : vector<8x32xf32>
    %cst_64 = arith.constant 9.99999974E-6 : f32
    %113 = vector.broadcast %cst_64 : f32 to vector<8x1xf32>
    %114 = arith.addf %110, %113 : vector<8x1xf32>
    %115 = math.rsqrt %114 : vector<8x1xf32>
    %116 = vector.broadcast %115 : vector<8x1xf32> to vector<8x32xf32>
    %117 = arith.mulf %112, %116 : vector<8x32xf32>
    %c0_65 = arith.constant 0 : index
    %c0_66 = arith.constant 0 : index
    %118 = vector.load %arg15[%c0_65, %c0_66] : memref<1x32xf32, #tpu.memory_space<vmem>>, vector<1x32xf32>
    %119 = vector.broadcast %118 : vector<1x32xf32> to vector<8x32xf32>
    %120 = arith.mulf %117, %119 : vector<8x32xf32>
    %c0_67 = arith.constant 0 : index
    %c0_68 = arith.constant 0 : index
    %121 = vector.load %arg16[%c0_67, %c0_68] : memref<1x32xf32, #tpu.memory_space<vmem>>, vector<1x32xf32>
    %122 = vector.broadcast %121 : vector<1x32xf32> to vector<8x32xf32>
    %123 = arith.addf %120, %122 : vector<8x32xf32>
    %124 = arith.truncf %123 : vector<8x32xf32> to vector<8x32xbf16>
    %c0_69 = arith.constant 0 : index
    %c0_70 = arith.constant 0 : index
    %125 = vector.load %arg17[%c0_69, %c0_70] : memref<32x128xbf16, #tpu.memory_space<vmem>>, vector<32x128xbf16>
    %cst_71 = arith.constant dense<0.000000e+00> : vector<8x128xf32>
    %126 = tpu.matmul %124, %125, %cst_71 {dimension_numbers = #tpu.dot_dimension_numbers<[1], [0], [0], [1], [0, 0, 1, 1], [], []>} : vector<8x32xbf16>, vector<32x128xbf16>, vector<8x128xf32> -> vector<8x128xf32>
    %c0_72 = arith.constant 0 : index
    %c0_73 = arith.constant 0 : index
    %127 = vector.load %arg18[%c0_72, %c0_73] : memref<1x128xf32, #tpu.memory_space<vmem>>, vector<1x128xf32>
    %128 = vector.broadcast %127 : vector<1x128xf32> to vector<8x128xf32>
    %129 = arith.addf %126, %128 : vector<8x128xf32>
    %cst_74 = arith.constant 5.000000e-01 : f32
    %130 = vector.broadcast %cst_74 : f32 to vector<8x128xf32>
    %131 = arith.mulf %130, %129 : vector<8x128xf32>
    %cst_75 = arith.constant 4.471500e-02 : f32
    %132 = vector.broadcast %cst_75 : f32 to vector<8x128xf32>
    %133 = arith.mulf %132, %129 : vector<8x128xf32>
    %134 = arith.mulf %133, %129 : vector<8x128xf32>
    %135 = arith.mulf %134, %129 : vector<8x128xf32>
    %136 = arith.addf %129, %135 : vector<8x128xf32>
    %cst_76 = arith.constant 0.797884583 : f32
    %137 = vector.broadcast %cst_76 : f32 to vector<8x128xf32>
    %138 = arith.mulf %137, %136 : vector<8x128xf32>
    %139 = math.tanh %138 : vector<8x128xf32>
    %cst_77 = arith.constant 1.000000e+00 : f32
    %140 = vector.broadcast %cst_77 : f32 to vector<8x128xf32>
    %141 = arith.addf %140, %139 : vector<8x128xf32>
    %142 = arith.mulf %131, %141 : vector<8x128xf32>
    %143 = arith.truncf %142 : vector<8x128xf32> to vector<8x128xbf16>
    %c0_78 = arith.constant 0 : index
    %c0_79 = arith.constant 0 : index
    %144 = vector.load %arg19[%c0_78, %c0_79] : memref<128x32xbf16, #tpu.memory_space<vmem>>, vector<128x32xbf16>
    %cst_80 = arith.constant dense<0.000000e+00> : vector<8x32xf32>
    %145 = tpu.matmul %143, %144, %cst_80 {dimension_numbers = #tpu.dot_dimension_numbers<[1], [0], [0], [1], [0, 0, 1, 1], [], []>} : vector<8x128xbf16>, vector<128x32xbf16>, vector<8x32xf32> -> vector<8x32xf32>
    %c0_81 = arith.constant 0 : index
    %c0_82 = arith.constant 0 : index
    %146 = vector.load %arg20[%c0_81, %c0_82] : memref<1x32xf32, #tpu.memory_space<vmem>>, vector<1x32xf32>
    %147 = vector.broadcast %146 : vector<1x32xf32> to vector<8x32xf32>
    %148 = arith.addf %145, %147 : vector<8x32xf32>
    %149 = arith.addf %123, %148 : vector<8x32xf32>
    %cst_83 = arith.constant dense<0.000000e+00> : vector<8xf32>
    %150 = vector.multi_reduction <add>, %149, %cst_83 [1] : vector<8x32xf32> to vector<8xf32>
    %151 = vector.shape_cast %150 : vector<8xf32> to vector<8x1xf32>
    %cst_84 = arith.constant 3.200000e+01 : f32
    %152 = vector.broadcast %cst_84 : f32 to vector<8x1xf32>
    %153 = arith.divf %151, %152 : vector<8x1xf32>
    %154 = vector.broadcast %153 : vector<8x1xf32> to vector<8x32xf32>
    %155 = arith.subf %149, %154 : vector<8x32xf32>
    %156 = arith.mulf %155, %155 : vector<8x32xf32>
    %cst_85 = arith.constant dense<0.000000e+00> : vector<8xf32>
    %157 = vector.multi_reduction <add>, %156, %cst_85 [1] : vector<8x32xf32> to vector<8xf32>
    %158 = vector.shape_cast %157 : vector<8xf32> to vector<8x1xf32>
    %cst_86 = arith.constant 3.200000e+01 : f32
    %159 = vector.broadcast %cst_86 : f32 to vector<8x1xf32>
    %160 = arith.divf %158, %159 : vector<8x1xf32>
    %161 = vector.broadcast %153 : vector<8x1xf32> to vector<8x32xf32>
    %162 = arith.subf %149, %161 : vector<8x32xf32>
    %cst_87 = arith.constant 9.99999974E-6 : f32
    %163 = vector.broadcast %cst_87 : f32 to vector<8x1xf32>
    %164 = arith.addf %160, %163 : vector<8x1xf32>
    %165 = math.rsqrt %164 : vector<8x1xf32>
    %166 = vector.broadcast %165 : vector<8x1xf32> to vector<8x32xf32>
    %167 = arith.mulf %162, %166 : vector<8x32xf32>
    %c0_88 = arith.constant 0 : index
    %c0_89 = arith.constant 0 : index
    %168 = vector.load %arg21[%c0_88, %c0_89] : memref<1x32xf32, #tpu.memory_space<vmem>>, vector<1x32xf32>
    %169 = vector.broadcast %168 : vector<1x32xf32> to vector<8x32xf32>
    %170 = arith.mulf %167, %169 : vector<8x32xf32>
    %c0_90 = arith.constant 0 : index
    %c0_91 = arith.constant 0 : index
    %171 = vector.load %arg22[%c0_90, %c0_91] : memref<1x32xf32, #tpu.memory_space<vmem>>, vector<1x32xf32>
    %172 = vector.broadcast %171 : vector<1x32xf32> to vector<8x32xf32>
    %173 = arith.addf %170, %172 : vector<8x32xf32>
    %c0_92 = arith.constant 0 : index
    %c0_93 = arith.constant 0 : index
    %c0_94 = arith.constant 0 : index
    %174 = vector.load %arg23[%c0_92, %c0_93, %c0_94] : memref<1x8x32xf32, #tpu.memory_space<vmem>>, vector<1x8x32xf32>
    %175 = vector.shape_cast %174 : vector<1x8x32xf32> to vector<8x32xf32>
    %176 = vector.shape_cast %173 : vector<8x32xf32> to vector<1x8x32xf32>
    tpu.vector_store %arg23[%c0_92, %c0_93, %c0_94], %176 {strides = array<i32>} : memref<1x8x32xf32, #tpu.memory_space<vmem>>, vector<1x8x32xf32>,
    return
  }
  func.func @transform_0(%arg0: i32) -> (i32, i32, i32) {
    %c0_i32 = arith.constant 0 : i32
    %c0_i32_0 = arith.constant 0 : i32
    %c0_i32_1 = arith.constant 0 : i32
    return %arg0, %c0_i32, %c0_i32_0 : i32, i32, i32
  }
  func.func @transform_1(%arg0: i32) -> (i32, i32, i32) {
    %c0_i32 = arith.constant 0 : i32
    %c0_i32_0 = arith.constant 0 : i32
    %c0_i32_1 = arith.constant 0 : i32
    return %arg0, %c0_i32, %c0_i32_0 : i32, i32, i32
  }
  func.func @transform_2(%arg0: i32) -> (i32, i32, i32) {
    %c0_i32 = arith.constant 0 : i32
    %c0_i32_0 = arith.constant 0 : i32
    %c0_i32_1 = arith.constant 0 : i32
    return %arg0, %c0_i32, %c0_i32_0 : i32, i32, i32
  }
  func.func @transform_3(%arg0: i32) -> (i32, i32, i32) {
    %c0_i32 = arith.constant 0 : i32
    %c0_i32_0 = arith.constant 0 : i32
    %c0_i32_1 = arith.constant 0 : i32
    %c0_i32_2 = arith.constant 0 : i32
    return %c0_i32, %c0_i32_0, %c0_i32_1 : i32, i32, i32
  }
  func.func @transform_4(%arg0: i32) -> (i32, i32, i32) {
    %c0_i32 = arith.constant 0 : i32
    %c0_i32_0 = arith.constant 0 : i32
    %c0_i32_1 = arith.constant 0 : i32
    %c0_i32_2 = arith.constant 0 : i32
    return %c0_i32, %c0_i32_0, %c0_i32_1 : i32, i32, i32
  }
  func.func @transform_5(%arg0: i32) -> (i32, i32, i32) {
    %c0_i32 = arith.constant 0 : i32
    %c0_i32_0 = arith.constant 0 : i32
    %c0_i32_1 = arith.constant 0 : i32
    %c0_i32_2 = arith.constant 0 : i32
    return %c0_i32, %c0_i32_0, %c0_i32_1 : i32, i32, i32
  }
  func.func @transform_6(%arg0: i32) -> (i32, i32, i32) {
    %c0_i32 = arith.constant 0 : i32
    %c0_i32_0 = arith.constant 0 : i32
    %c0_i32_1 = arith.constant 0 : i32
    %c0_i32_2 = arith.constant 0 : i32
    return %c0_i32, %c0_i32_0, %c0_i32_1 : i32, i32, i32
  }
  func.func @transform_7(%arg0: i32) -> (i32, i32) {
    %c0_i32 = arith.constant 0 : i32
    %c0_i32_0 = arith.constant 0 : i32
    %c0_i32_1 = arith.constant 0 : i32
    return %c0_i32, %c0_i32_0 : i32, i32
  }
  func.func @transform_8(%arg0: i32) -> (i32, i32) {
    %c0_i32 = arith.constant 0 : i32
    %c0_i32_0 = arith.constant 0 : i32
    %c0_i32_1 = arith.constant 0 : i32
    return %c0_i32, %c0_i32_0 : i32, i32
  }
  func.func @transform_9(%arg0: i32) -> (i32, i32) {
    %c0_i32 = arith.constant 0 : i32
    %c0_i32_0 = arith.constant 0 : i32
    %c0_i32_1 = arith.constant 0 : i32
    return %c0_i32, %c0_i32_0 : i32, i32
  }
  func.func @transform_10(%arg0: i32) -> (i32, i32, i32) {
    %c0_i32 = arith.constant 0 : i32
    %c0_i32_0 = arith.constant 0 : i32
    %c0_i32_1 = arith.constant 0 : i32
    %c0_i32_2 = arith.constant 0 : i32
    return %c0_i32, %c0_i32_0, %c0_i32_1 : i32, i32, i32
  }
  func.func @transform_11(%arg0: i32) -> (i32, i32, i32) {
    %c0_i32 = arith.constant 0 : i32
    %c0_i32_0 = arith.constant 0 : i32
    %c0_i32_1 = arith.constant 0 : i32
    %c0_i32_2 = arith.constant 0 : i32
    return %c0_i32, %c0_i32_0, %c0_i32_1 : i32, i32, i32
  }
  func.func @transform_12(%arg0: i32) -> (i32, i32, i32) {
    %c0_i32 = arith.constant 0 : i32
    %c0_i32_0 = arith.constant 0 : i32
    %c0_i32_1 = arith.constant 0 : i32
    %c0_i32_2 = arith.constant 0 : i32
    return %c0_i32, %c0_i32_0, %c0_i32_1 : i32, i32, i32
  }
  func.func @transform_13(%arg0: i32) -> (i32, i32, i32) {
    %c0_i32 = arith.constant 0 : i32
    %c0_i32_0 = arith.constant 0 : i32
    %c0_i32_1 = arith.constant 0 : i32
    %c0_i32_2 = arith.constant 0 : i32
    return %c0_i32, %c0_i32_0, %c0_i32_1 : i32, i32, i32
  }
  func.func @transform_14(%arg0: i32) -> (i32, i32) {
    %c0_i32 = arith.constant 0 : i32
    %c0_i32_0 = arith.constant 0 : i32
    %c0_i32_1 = arith.constant 0 : i32
    return %c0_i32, %c0_i32_0 : i32, i32
  }
  func.func @transform_15(%arg0: i32) -> (i32, i32) {
    %c0_i32 = arith.constant 0 : i32
    %c0_i32_0 = arith.constant 0 : i32
    %c0_i32_1 = arith.constant 0 : i32
    return %c0_i32, %c0_i32_0 : i32, i32
  }
  func.func @transform_16(%arg0: i32) -> (i32, i32) {
    %c0_i32 = arith.constant 0 : i32
    %c0_i32_0 = arith.constant 0 : i32
    %c0_i32_1 = arith.constant 0 : i32
    return %c0_i32, %c0_i32_0 : i32, i32
  }
  func.func @transform_17(%arg0: i32) -> (i32, i32) {
    %c0_i32 = arith.constant 0 : i32
    %c0_i32_0 = arith.constant 0 : i32
    %c0_i32_1 = arith.constant 0 : i32
    return %c0_i32, %c0_i32_0 : i32, i32
  }
  func.func @transform_18(%arg0: i32) -> (i32, i32) {
    %c0_i32 = arith.constant 0 : i32
    %c0_i32_0 = arith.constant 0 : i32
    %c0_i32_1 = arith.constant 0 : i32
    return %c0_i32, %c0_i32_0 : i32, i32
  }
  func.func @transform_19(%arg0: i32) -> (i32, i32) {
    %c0_i32 = arith.constant 0 : i32
    %c0_i32_0 = arith.constant 0 : i32
    %c0_i32_1 = arith.constant 0 : i32
    return %c0_i32, %c0_i32_0 : i32, i32
  }
  func.func @transform_20(%arg0: i32) -> (i32, i32) {
    %c0_i32 = arith.constant 0 : i32
    %c0_i32_0 = arith.constant 0 : i32
    %c0_i32_1 = arith.constant 0 : i32
    return %c0_i32, %c0_i32_0 : i32, i32
  }
  func.func @transform_21(%arg0: i32) -> (i32, i32) {
    %c0_i32 = arith.constant 0 : i32
    %c0_i32_0 = arith.constant 0 : i32
    %c0_i32_1 = arith.constant 0 : i32
    return %c0_i32, %c0_i32_0 : i32, i32
  }
  func.func @transform_22(%arg0: i32) -> (i32, i32, i32) {
    %c0_i32 = arith.constant 0 : i32
    %c0_i32_0 = arith.constant 0 : i32
    %c0_i32_1 = arith.constant 0 : i32
    return %arg0, %c0_i32, %c0_i32_0 : i32, i32, i32
  }
}

</mosaic_0001>

<bundles_post_ra>
// kernel: tpu_custom_call.1
= control target key start
LH: loop header
LB: loop body
LE: loop exit
PB: predicated region body
PF: predicated region fallthrough
CT: control target
= control target key end

     0   :  { %s3489_s0 = inlined_call_operand.vmem [shape: f32[2,8,32], index: 0, kind: input, shape index: {}]   ;;  %s3490_s1 = inlined_call_operand.vmem [shape: f32[2,8,32], index: 1, kind: input, shape index: {}]   ;;  %s3491_s2 = inlined_call_operand.vmem [shape: f32[2,8,32], index: 2, kind: input, shape index: {}]   ;;  %s3492_s3 = inlined_call_operand.vmem [shape: bf16[4,32,8], index: 3, kind: input, shape index: {}]   ;;  %s3493_s4 = inlined_call_operand.vmem [shape: bf16[4,32,8], index: 4, kind: input, shape index: {}]   ;;  %s3494_s5 = inlined_call_operand.vmem [shape: bf16[4,32,8], index: 5, kind: input, shape index: {}]   ;;  %s3495_s6 = inlined_call_operand.vmem [shape: bf16[4,8,32], index: 6, kind: input, shape index: {}]   ;;  %s3496_s7 = inlined_call_operand.vmem [shape: f32[1,32], index: 7, kind: input, shape index: {}]   ;;  %s3497_s8 = inlined_call_operand.vmem [shape: f32[1,32], index: 8, kind: input, shape index: {}]   ;;  %s3498_s9 = inlined_call_operand.vmem [shape: f32[1,32], index: 9, kind: input, shape index: {}]   ;;  %s3499_s10 = inlined_call_operand.vmem [shape: bf16[4,32,8], index: 10, kind: input, shape index: {}]   ;;  %s3500_s11 = inlined_call_operand.vmem [shape: bf16[4,32,8], index: 11, kind: input, shape index: {}]   ;;  %s3501_s12 = inlined_call_operand.vmem [shape: bf16[4,32,8], index: 12, kind: input, shape index: {}]   ;;  %s3502_s13 = inlined_call_operand.vmem [shape: bf16[4,8,32], index: 13, kind: input, shape index: {}]   ;;  %s3503_s14 = inlined_call_operand.vmem [shape: f32[1,32], index: 14, kind: input, shape index: {}]   ;;  %s3504_s15 = inlined_call_operand.vmem [shape: f32[1,32], index: 15, kind: input, shape index: {}]   ;;  %s3505_s16 = inlined_call_operand.vmem [shape: bf16[32,128], index: 16, kind: input, shape index: {}]   ;;  %s3506_s17 = inlined_call_operand.vmem [shape: f32[1,128], index: 17, kind: input, shape index: {}]   ;;  %s3507_s18 = inlined_call_operand.vmem [shape: bf16[128,32], index: 18, kind: input, shape index: {}]   ;;  %s3508_s19 = inlined_call_operand.vmem [shape: f32[1,32], index: 19, kind: input, shape index: {}]   ;;  %s3509_s20 = inlined_call_operand.vmem [shape: f32[1,32], index: 20, kind: input, shape index: {}]   ;;  %s3510_s21 = inlined_call_operand.vmem [shape: f32[1,32], index: 21, kind: input, shape index: {}]   ;;  %s3511_s22 = inlined_call_operand.hbm [shape: f32[2,8,32], index: 22, kind: output, shape index: {}]  }
   0x1   :  { %3526 = sst [smem:[#allocation12_spill]] %s3489_s0 }
   0x2   :  { %3527 = sst [smem:[#allocation13_spill]] %s3490_s1 }
   0x3   :  { %3528 = sst [smem:[#allocation14_spill]] %s3491_s2 }
   0x4   :  { %3529 = sst [smem:[#allocation15_spill]] %s3492_s3 }
   0x5   :  { %3530 = sst [smem:[#allocation16_spill]] %s3493_s4 }
   0x6   :  { %3531 = sst [smem:[#allocation17_spill]] %s3494_s5 }
   0x7   :  { %3532 = sst [smem:[#allocation18_spill]] %s3495_s6 }
   0x8   :  { %3533 = sst [smem:[#allocation19_spill]] %s3496_s7 }
   0x9   :  { %3534 = sst [smem:[#allocation20_spill]] %s3497_s8 }
   0xa   :  { %3535 = sst [smem:[#allocation21_spill]] %s3498_s9 }
   0xb   :  { %3536 = sst [smem:[#allocation22_spill]] %s3509_s20 }
   0xc   :  { %3537 = sst [smem:[#allocation23_spill]] %s3510_s21 }
   0xd   :  { %3538 = sst [smem:[#allocation24_spill]] %s3511_s22 }
   0xe   :  { %27 = vsyncpa [#allocation3], 0 }
   0xf   :  { %29 = vsyncpa [#allocation3 + $0x1], 0  ;;  %s3050_s3 = smov 0   ;;  %s3052_s28 = smov 0  }
  0x10   :  { %s3054_s29 = smov 0   ;;  %s3056_s30 = smov 0  }
  0x11 LB: > { %3539 = sst [smem:[#allocation5_spill]] %s2920_s3  ;;  %s3071_s4 = sadd.s32 4294967295, %s2932_s30   ;;  %s2932_s30 = sphi %s3056_s30, %s3566_s30   ;;  %s2928_s29 = sphi %s3054_s29, %s3568_s29   ;;  %s2924_s28 = sphi %s3052_s28, %s3570_s28   ;;  %s2920_s3 = sphi %s3050_s3, %s3569_s3  }
  0x12   : > { %3540 = sst [smem:[#allocation6_spill]] %s2928_s29  ;;  %s2428_s0 = sadd.s32 4294967294, %s2932_s30  }
  0x13   : > { %3541 = sst [smem:[#allocation7_spill]] %s2932_s30  ;;  %s3075_s23 = sadd.s32 1, %s2932_s30  }
  0x14   : > { %3542 = sst [smem:[#allocation8_spill]] %s3075_s23  ;;  %s519_s1 = sadd.s32 1, %s2928_s29 }
  0x15   : > { %s516_s5 = ssub.s32 %s2932_s30, %s3075_s23  ;;  %p529_p0 = scmp.ne.s32.totalorder %s2928_s29, %s2924_s28 }
  0x16   : > { %p517_p1 = scmp.eq.s32.totalorder %s516_s5, 0  ;;  %p530_p2 = scmp.eq.s32.totalorder %s3071_s4, 1 }
  0x17   : > { %p535_p3 = scmp.ne.s32.totalorder %s2924_s28, %s2920_s3  ;;  %p536_p4 = scmp.eq.s32.totalorder %s2428_s0, 1 }
  0x18   : > { %s3086_s24 = scalar_select %p517_p1, %s2928_s29, %s519_s1  }
  0x19   : > { %p3088_p5 = por %p530_p2, %p529_p0  ;;  %p3092_p6 = por %p536_p4, %p535_p3 }
  0x1a   : > { %3543 = sst [smem:[#allocation9_spill]] %s3086_s24  ;;  %p2431_p7 = scmp.ge.s32.totalorder %s2932_s30, 1 }
  0x1b   : > { %s3544_s6 = scalar_select %p3088_p5, 1, 0 }
  0x1c   : > { %s3546_s25 = scalar_select %p3092_p6, 1, 0 }
  0x1d   : > { %3545 = sst [smem:[#allocation10_spill]] %s3544_s6  ;;  %p632_p8 = scmp.lt.s32.totalorder %s2932_s30, 3 }
  0x1e   : > { %3547 = sst [smem:[#allocation11_spill]] %s3546_s25 }
  0x1f   : > { %p633_p9 = pnand %p2431_p7, %p632_p8 }
  0x20   : > { %s3548_s27 = sld [smem:[#allocation15_spill]] (!%p633_p9)  ;;  %p701_p10 = scmp.lt.s32.totalorder (!%p633_p9), %s3071_s4, 1 }
  0x21   : > { %636 = sbr.rel (%p633_p9) target bundleno = 2566 (0xa06), region = 108  ;;  %s3549_s25 = sld [smem:[#allocation16_spill]] (!%p633_p9) }
  0x22   : > { %s3550_s22 = sld [smem:[#allocation12_spill]] (!%p633_p9)  ;;  %s698_s29 = sand.u32 (!%p633_p9), 1, %s2924_s28  }
  0x23   : > { %s3551_s30 = sld [smem:[#allocation17_spill]] (!%p633_p9)  ;;  %s2432_s3 = sshll.u32 (!%p633_p9), %s698_s29, 3 }
  0x24   : > { %s3553_s5 = sld [smem:[#allocation18_spill]] (!%p633_p9) }
  0x25   : > { %s3554_s7 = sld [smem:[#allocation19_spill]] (!%p633_p9) }
  0x26   : > { %v2722_v0 = vld [vmem:[%s3548_s27 + $0x8] sm:$0xff]  ;;  %v2724_v1 = vld [vmem:[%s3548_s27 + $0x18] sm:$0xff]  ;;  %v2721_v4 = vld [vmem:[%s3548_s27] sm:$0xff]  ;;  %s702_s0 = scalar_select %p701_p10, %s3071_s4, 1  ;;  %vm744_vm0 = vcmask 261120   ;;  %vm1080_vm1 = vcmask 64512  }
  0x27   : > { %v2728_v2 = vld [vmem:[%s3548_s27 + $0x38] sm:$0xff]  ;;  %754 = vmatpush.bf16.msra.mxu0 %v2722_v0  ;;  %779 = vmatpush.bf16.msra.mxu2 %v2724_v1  ;;  %v2723_v5 = vld [vmem:[%s3548_s27 + $0x10] sm:$0xff]  ;;  %v2726_v8 = vld [vmem:[%s3548_s27 + $0x28] sm:$0xff]  ;;  %vm1204_vm2 = vcmask 1043456   ;;  %s3555_s8 = sld [smem:[#allocation20_spill]]  ;;  %vm1906_vm7 = vcmask 130048  }
  0x28   : > { %v2732_v3 = vld [vmem:[%s3549_s25 + $0x18] sm:$0xff]  ;;  %829 = vmatpush.bf16.msra.mxu3 %v2728_v2  ;;  %v2727_v6 = vld [vmem:[%s3548_s27 + $0x30] sm:$0xff]  ;;  %s3124_s23 = sshll.u32 %s702_s0, 3  ;;  %v2730_v9 = vld [vmem:[%s3549_s25 + $0x8] sm:$0xff]  ;;  %s3556_s9 = sld [smem:[#allocation21_spill]] }
  0x29   : > { %899 = vmatpush.bf16.msra.mxu1 %v2732_v3  ;;  %v2731_v7 = vld [vmem:[%s3549_s25 + $0x10] sm:$0xff]  ;;  %s704_s24 = scalar_lea.vmem %s3550_s22, %s3124_s23  ;;  %v2736_v10 = vld [vmem:[%s3549_s25 + $0x38] sm:$0xff]  ;;  %v2725_v12 = vld [vmem:[%s3548_s27 + $0x20] sm:$0xff]  ;;  %s3552_s26 = smov %s3551_s30 }
  0x2a   : > { %v3139_v11 = vld [vmem:[%s704_s24] sm:$0xff]  ;;  %v2734_v15 = vld [vmem:[%s3549_s25 + $0x28] sm:$0xff]  ;;  %v2740_v16 = vld [vmem:[%s3551_s30 + $0x18] sm:$0xff]  ;;  %s3557_s30 = sld [smem:[#allocation13_spill]] }
  0x2b   : > { %755 = vmatpush.bf16.msra.mxu0 %v2721_v4  ;;  %780 = vmatpush.bf16.msra.mxu2 %v2723_v5  ;;  %v715_v13 = vpack.c.bf16 %v3139_v11, %v3139_v11  ;;  %v2729_v14 = vld [vmem:[%s3549_s25] sm:$0xff]  ;;  %v2735_v17 = vld [vmem:[%s3549_s25 + $0x30] sm:$0xff]  ;;  %v2738_v20 = vld [vmem:[%s3552_s26 + $0x8] sm:$0xff]  ;;  %s3558_s21 = sld [smem:[#allocation14_spill]] }
  0x2c   : > { %830 = vmatpush.bf16.msra.mxu3 %v2727_v6  ;;  %v2739_v18 = vld [vmem:[%s3552_s26 + $0x10] sm:$0xff]  ;;  %v2733_v19 = vld [vmem:[%s3549_s25 + $0x20] sm:$0xff]  ;;  %v2744_v22 = vld [vmem:[%s3552_s26 + $0x38] sm:$0xff]  ;;  %s3559_s1 = sld [smem:[#allocation22_spill]] }
  0x2d   : > { %900 = vmatpush.bf16.msra.mxu1 %v2731_v7  ;;  %v2737_v21 = vld [vmem:[%s3552_s26] sm:$0xff]  ;;  %v2743_v23 = vld [vmem:[%s3552_s26 + $0x30] sm:$0xff]  ;;  %v2742_v24 = vld [vmem:[%s3552_s26 + $0x28] sm:$0xff] }
  0x2e   : > { %2444 = vmatmul.msk.bf16.vlgmr.msra.gmra.mxu0 %vm744_vm0, %v715_v13  ;;  %2453 = vmatmul.msk.bf16.vlgmr.msra.gmra.mxu2 %vm744_vm0, %v715_v13  ;;  %v2741_v25 = vld [vmem:[%s3552_s26 + $0x20] sm:$0xff] }
  0x2f   : > { %804 = vmatpush.bf16.msrb.mxu2 %v2726_v8  ;;  %874 = vmatpush.bf16.msrb.mxu0 %v2730_v9 }
  0x30   : > { %2471 = vmatmul.msk.bf16.vlgmr.msra.gmra.mxu3 %vm744_vm0, %v715_v13  ;;  %2489 = vmatmul.msk.bf16.vlgmr.msra.gmra.mxu1 %vm744_vm0, %v715_v13  ;;  %s708_s2 = scalar_lea.vmem %s3557_s30, %s3124_s23  ;;  %s2718_s30 = sshll.u32 %s3071_s4, 3 }
  0x31   : > { %949 = vmatpush.bf16.msrb.mxu3 %v2736_v10  ;;  %1019 = vmatpush.bf16.msrb.mxu1 %v2740_v16  ;;  %s712_s0 = scalar_lea.vmem %s3558_s21, %s3124_s23  ;;  %s3560_s23 = sld [smem:[#allocation24_spill]] }
  0x33   : > { %805 = vmatpush.bf16.msrb.mxu2 %v2725_v12  ;;  %875 = vmatpush.bf16.msrb.mxu0 %v2729_v14 }
  0x35   : > { %950 = vmatpush.bf16.msrb.mxu3 %v2735_v17  ;;  %1020 = vmatpush.bf16.msrb.mxu1 %v2739_v18 }
  0x37   : > { %924 = vmatpush.bf16.msra.mxu2 %v2734_v15  ;;  %994 = vmatpush.bf16.msra.mxu0 %v2738_v20  ;;  %s2340_s22 = scalar_lea.hbm %s3560_s23, %s2718_s30 }
  0x39   : > { %1069 = vmatpush.bf16.msra.mxu3 %v2744_v22 }
  0x3b   : > { %925 = vmatpush.bf16.msra.mxu2 %v2733_v19  ;;  %995 = vmatpush.bf16.msra.mxu0 %v2737_v21 }
  0x3d   : > { %1070 = vmatpush.bf16.msra.mxu3 %v2743_v23 }
  0x3e   : > { %2462 = vmatmul.msk.bf16.vlgmr.msrb.gmra.mxu2 %vm744_vm0, %v715_v13  ;;  %2480 = vmatmul.msk.bf16.vlgmr.msrb.gmra.mxu0 %vm744_vm0, %v715_v13 }
  0x3f   : > { %1044 = vmatpush.bf16.msrb.mxu2 %v2742_v24 }
  0x40   : > { %2507 = vmatmul.msk.bf16.vlgmr.msrb.gmra.mxu3 %vm744_vm0, %v715_v13  ;;  %2525 = vmatmul.msk.bf16.vlgmr.msrb.gmra.mxu1 %vm744_vm0, %v715_v13 }
  0x43   : > { %1045 = vmatpush.bf16.msrb.mxu2 %v2741_v25 }
  0x4e   : > { %2498 = vmatmul.msk.bf16.vlgmr.msra.gmra.mxu2 %vm744_vm0, %v715_v13  ;;  %2516 = vmatmul.msk.bf16.vlgmr.msra.gmra.mxu0 %vm744_vm0, %v715_v13 }
  0x50   : > { %2543 = vmatmul.msk.bf16.vlgmr.msra.gmra.mxu3 %vm744_vm0, %v715_v13 }
  0x5e   : > { %2534 = vmatmul.msk.bf16.vlgmr.msrb.gmra.mxu2 %vm744_vm0, %v715_v13 }
  0xab   : > { %v757_v26 = vpop.f32.mrf.mxu0 }
  0xac   : > { %v836_v44 = vpack.c.bf16 %v757_v26, %v757_v26 }
  0xad   : > { %v902_v27 = vpop.f32.mrf.mxu1 }
  0xae   : > { %v957_v28 = vpack.c.bf16 %v902_v27, %v902_v27 }
  0xb0   : > { %v1104_v29 = vsel %vm1080_vm1, %v957_v28, 0 }
  0xb1   : > { %1113 = vmatpush.bf16.xpose.msra.mxu1 %v1104_v29  ;;  %v782_v30 = vpop.f32.mrf.mxu2 }
  0xb2   : > { %v837_v34 = vpack.c.bf16 %v782_v30, %v782_v30 }
  0xb3   : > { %v832_v31 = vpop.f32.mrf.mxu3  ;;  %v759_v32 = vpop.f32.mrf.mxu0 }
  0xb4   : > { %v839_v50 = vpack.c.bf16 %v832_v31, %v832_v31 }
  0xb5   : > { %v904_v33 = vpop.f32.mrf.mxu1 }
  0xb8   : > { %2545 = vmatmul.msk.bf16.vlgmr.msra.gmra.mxu1 %vm1080_vm1, %v837_v34 }
  0xb9   : > { %v784_v35 = vpop.f32.mrf.mxu2 }
  0xbb   : > { %v834_v36 = vpop.f32.mrf.mxu3  ;;  %v877_v37 = vpop.f32.mrf.mxu0 }
  0xbc   : > { %v956_v38 = vpack.c.bf16 %v877_v37, %v877_v37 }
  0xbd   : > { %v1022_v39 = vpop.f32.mrf.mxu1 }
  0xbe   : > { %v1077_v40 = vpack.c.bf16 %v1022_v39, %v1022_v39  ;;  %v1085_v41 = vsel %vm1080_vm1, %v956_v38, 0 }
  0xbf   : > { %1094 = vmatpush.bf16.xpose.msrb.mxu0 %v1085_v41 }
  0xc0   : > { %v1225_v42 = vsel %vm1204_vm2, %v1077_v40, 0 }
  0xc1   : > { %1234 = vmatpush.bf16.msrb.mxu1 %v1225_v42  ;;  %v807_v43 = vpop.f32.mrf.mxu2 }
  0xc2   : > { %v838_v57 = vpack.c.bf16 %v807_v43, %v807_v43  ;;  %v1286_v43 = vld [vmem:[%s3553_s5] sm:$0xf] }
  0xc3   : > { %v952_v45 = vpop.f32.mrf.mxu3  ;;  %v879_v47 = vpop.f32.mrf.mxu0 }
  0xc4   : > { %v959_v46 = vpack.c.bf16 %v952_v45, %v952_v45  ;;  %v1287_v45 = vld [vmem:[%s3553_s5 + $0x4] sm:$0xf] }
  0xc5   : > { %v1024_v48 = vpop.f32.mrf.mxu1 }
  0xc6   : > { %v1142_v49 = vsel %vm1080_vm1, %v959_v46, 0  ;;  %2544 = vmatmul.msk.bf16.vlgmr.msrb.gmra.mxu0 %vm1080_vm1, %v836_v44  ;;  %v1294_v44 = vsel %vm1204_vm2, %v1286_v43, 0  ;;  %v1313_v46 = vsel %vm1204_vm2, %v1287_v45, 0  ;;  %v2748_v43 = vld [vmem:[%s3499_s10 + $0x18] sm:$0xff] }
  0xc7   : > { %1151 = vmatpush.bf16.xpose.msrb.mxu3 %v1142_v49  ;;  %1322 = vmatpush.bf16.msra.mxu1 %v1313_v46  ;;  %v2752_v45 = vld [vmem:[%s3499_s10 + $0x38] sm:$0xff]  ;;  %v2745_v46 = vld [vmem:[%s3499_s10] sm:$0xff] }
  0xc9   : > { %v809_v51 = vpop.f32.mrf.mxu2 }
  0xcb   : > { %v954_v52 = vpop.f32.mrf.mxu3  ;;  %v997_v58 = vpop.f32.mrf.mxu0 }
  0xcc   : > { %v1076_v59 = vpack.c.bf16 %v997_v58, %v997_v58 }
  0xce   : > { %2547 = vmatmul.msk.bf16.vlgmr.msrb.gmra.mxu3 %vm1080_vm1, %v839_v50  ;;  %v1206_v60 = vsel %vm1204_vm2, %v1076_v59, 0 }
  0xcf   : > { %1215 = vmatpush.bf16.msra.mxu0 %v1206_v60 }
  0xd1   : > { %v927_v53 = vpop.f32.mrf.mxu2 }
  0xd2   : > { %v958_v54 = vpack.c.bf16 %v927_v53, %v927_v53  ;;  %v1288_v53 = vld [vmem:[%s3553_s5 + $0x8] sm:$0xf] }
  0xd3   : > { %v999_v61 = vpop.f32.mrf.mxu0  ;;  %v1072_v62 = vpop.f32.mrf.mxu3  ;;  %1303 = vmatpush.bf16.msrb.mxu0 %v1294_v44  ;;  %v2750_v44 = vld [vmem:[%s3499_s10 + $0x28] sm:$0xff] }
  0xd4   : > { %v1123_v55 = vsel %vm1080_vm1, %v958_v54, 0  ;;  %v1079_v63 = vpack.c.bf16 %v1072_v62, %v1072_v62  ;;  %v1332_v54 = vsel %vm1204_vm2, %v1288_v53, 0  ;;  %v2758_v53 = vld [vmem:[%s3500_s11 + $0x28] sm:$0xff] }
  0xd5   : > { %1132 = vmatpush.bf16.xpose.msra.mxu2 %v1123_v55  ;;  %v1289_v55 = vld [vmem:[%s3553_s5 + $0xc] sm:$0xf] }
  0xd6   : > { %v1263_v0 = vsel %vm1204_vm2, %v1079_v63, 0  ;;  %v1351_v59 = vsel %vm1204_vm2, %v1289_v55, 0  ;;  %v2760_v55 = vld [vmem:[%s3500_s11 + $0x38] sm:$0xff] }
  0xd7   : > { %1272 = vmatpush.bf16.msra.mxu3 %v1263_v0 }
  0xd9   : > { %v929_v56 = vpop.f32.mrf.mxu2 }
  0xdb   : > { %v1074_v2 = vpop.f32.mrf.mxu3  ;;  %1360 = vmatpush.bf16.msrb.mxu3 %v1351_v59  ;;  %v2757_v59 = vld [vmem:[%s3500_s11 + $0x20] sm:$0xff] }
  0xdc   : > { %2546 = vmatmul.msk.bf16.vlgmr.msra.gmra.mxu2 %vm1080_vm1, %v838_v57 }
  0xe1   : > { %v1047_v1 = vpop.f32.mrf.mxu2 }
  0xe2   : > { %v1078_v3 = vpack.c.bf16 %v1047_v1, %v1047_v1 }
  0xe4   : > { %v1244_v4 = vsel %vm1204_vm2, %v1078_v3, 0 }
  0xe5   : > { %1253 = vmatpush.bf16.msrb.mxu2 %v1244_v4 }
  0xe9   : > { %v1049_v5 = vpop.f32.mrf.mxu2  ;;  %1341 = vmatpush.bf16.msra.mxu2 %v1332_v54 }
 0x135   : > { %v1115_v6 = vpop.f32.mrf.mxu1 }
 0x136   : > { %v1160_v12 = vsel %vm1080_vm1, %v1115_v6, -inf }
 0x13d   : > { %v1117_v7 = vpop.f32.mrf.mxu1 }
 0x143   : > { %v1096_v8 = vpop.f32.mrf.mxu0 }
 0x144   : > { %v1157_v9 = vsel %vm1080_vm1, %v1096_v8, -inf }
 0x145   : > { %1158 = vmax.xlane.f32.xlu1 %v1157_v9 }
 0x14b   : > { %v1098_v10 = vpop.f32.mrf.mxu0 }
 0x14d   : > { %1161 = vmax.xlane.f32.xlu1 %v1160_v12 }
 0x151   : > { %v1153_v13 = vpop.f32.mrf.mxu3 }
 0x152   : > { %v1166_v18 = vsel %vm1080_vm1, %v1153_v13, -inf }
 0x159   : > { %v1155_v14 = vpop.f32.mrf.mxu3 }
 0x15f   : > { %v1134_v15 = vpop.f32.mrf.mxu2 }
 0x160   : > { %v1163_v16 = vsel %vm1080_vm1, %v1134_v15, -inf }
 0x161   : > { %1164 = vmax.xlane.f32.xlu0 %v1163_v16 }
 0x167   : > { %v1136_v17 = vpop.f32.mrf.mxu2 }
 0x169   : > { %1167 = vmax.xlane.f32.xlu0 %v1166_v18 }
 0x1b8   : > { %v1159_v19 = vpop.xlane.xlu1 %1158 }
 0x1b9   : > { %v1169_v20 = vsub.f32 %v1096_v8, %v1159_v19 }
 0x1bb   : > { %v1173_v21 = vmul.f32 1.442695, %v1169_v20 }
 0x1bd   : > { %2828 = vpow2.f32 %v1173_v21 }
 0x1c0   : > { %v1162_v22 = vpop.xlane.xlu1 %1161 }
 0x1c1   : > { %v1170_v23 = vsub.f32 %v1115_v6, %v1162_v22 }
 0x1c3   : > { %v2829_v24 = vpop.eup %2828  ;;  %v1175_v25 = vmul.f32 1.442695, %v1170_v23 }
 0x1c4   : > { %v1197_v26 = vpack.c.bf16 %v2829_v24, %v2829_v24  ;;  %v1181_v27 = vsel %vm1080_vm1, %v2829_v24, 0.0  ;;  %v2819_v24 = vld [vmem:[%s3554_s7] ss:$0 sm:$0xff]  ;;  %s3562_s7 = sld [smem:[#allocation23_spill]] }
 0x1c5   : > { %2830 = vpow2.f32 %v1175_v25  ;;  %1182 = vadd.xlane.f32.xlu0 %v1181_v27 }
 0x1c6   : > { %2548 = vmatmul.msk.bf16.vlgmr.msra.gmra.mxu0 %vm1080_vm1, %v1197_v26 }
 0x1cb   : > { %v2831_v28 = vpop.eup %2830 }
 0x1cc   : > { %v1198_v29 = vpack.c.bf16 %v2831_v28, %v2831_v28  ;;  %v1184_v30 = vsel %vm1080_vm1, %v2831_v28, 0.0 }
 0x1cd   : > { %1185 = vadd.xlane.f32.xlu1 %v1184_v30 }
 0x1ce   : > { %2549 = vmatmul.msk.bf16.vlgmr.msrb.gmra.mxu1 %vm1080_vm1, %v1198_v29 }
 0x1cf   : > { %1485 = vmatpush.bf16.msrb.mxu1 %v2748_v43 }
 0x1d4   : > { %v1165_v31 = vpop.xlane.xlu0 %1164 }
 0x1d5   : > { %v1171_v32 = vsub.f32 %v1134_v15, %v1165_v31  ;;  %v2934_v31 = vmov 32.0  }
 0x1d7   : > { %v1177_v33 = vmul.f32 1.442695, %v1171_v32 }
 0x1d9   : > { %2832 = vpow2.f32 %v1177_v33 }
 0x1dc   : > { %v1168_v34 = vpop.xlane.xlu0 %1167 }
 0x1dd   : > { %v1172_v35 = vsub.f32 %v1153_v13, %v1168_v34 }
 0x1df   : > { %v2833_v36 = vpop.eup %2832  ;;  %v1179_v37 = vmul.f32 1.442695, %v1172_v35 }
 0x1e0   : > { %v1199_v38 = vpack.c.bf16 %v2833_v36, %v2833_v36  ;;  %v1187_v39 = vsel %vm1080_vm1, %v2833_v36, 0.0 }
 0x1e1   : > { %2834 = vpow2.f32 %v1179_v37  ;;  %1188 = vadd.xlane.f32.xlu2 %v1187_v39 }
 0x1e2   : > { %2550 = vmatmul.msk.bf16.vlgmr.msrb.gmra.mxu2 %vm1080_vm1, %v1199_v38 }
 0x1e3   : > { %1510 = vmatpush.bf16.msrb.mxu2 %v2750_v44 }
 0x1e7   : > { %v2835_v40 = vpop.eup %2834 }
 0x1e8   : > { %v1200_v41 = vpack.c.bf16 %v2835_v40, %v2835_v40  ;;  %v1190_v42 = vsel %vm1080_vm1, %v2835_v40, 0.0 }
 0x1e9   : > { %1191 = vadd.xlane.f32.xlu2 %v1190_v42  ;;  %v2746_v42 = vld [vmem:[%s3499_s10 + $0x8] sm:$0xff] }
 0x1ea   : > { %2551 = vmatmul.msk.bf16.vlgmr.msra.gmra.mxu3 %vm1080_vm1, %v1200_v41  ;;  %1460 = vmatpush.bf16.msra.mxu0 %v2746_v42 }
 0x1eb   : > { %1535 = vmatpush.bf16.msra.mxu3 %v2752_v45 }
 0x1ee   : > { %1461 = vmatpush.bf16.msra.mxu0 %v2745_v46 }
 0x238   : > { %v1183_v47 = vpop.xlane.xlu0 %1182 }
 0x239   : > { %2836 = vrcp.f32 %v1183_v47  ;;  %v2747_v47 = vld [vmem:[%s3499_s10 + $0x10] sm:$0xff] }
 0x23a   : > { %1486 = vmatpush.bf16.msrb.mxu1 %v2747_v47 }
 0x23f   : > { %v2837_v49 = vpop.eup %2836 }
 0x240   : > { %v1186_v48 = vpop.xlane.xlu1 %1185 }
 0x241   : > { %2838 = vrcp.f32 %v1186_v48  ;;  %v2749_v48 = vld [vmem:[%s3499_s10 + $0x20] sm:$0xff] }
 0x242   : > { %1511 = vmatpush.bf16.msrb.mxu2 %v2749_v48 }
 0x243   : > { %v1217_v50 = vpop.f32.mrf.mxu0 }
 0x244   : > { %v1278_v51 = vmul.f32 %v2837_v49, %v1217_v50  ;;  %v2751_v49 = vld [vmem:[%s3499_s10 + $0x30] sm:$0xff] }
 0x245   : > { %1536 = vmatpush.bf16.msra.mxu3 %v2751_v49 }
 0x246   : > { %v1282_v52 = vpack.c.bf16 %v1278_v51, %v1278_v51  ;;  %v2754_v51 = vld [vmem:[%s3500_s11 + $0x8] sm:$0xff] }
 0x247   : > { %v2839_v56 = vpop.eup %2838 }
 0x248   : > { %2552 = vmatmul.msk.bf16.vlgmr.msrb.gmra.mxu0 %vm1080_vm1, %v1282_v52  ;;  %v2756_v52 = vld [vmem:[%s3500_s11 + $0x18] sm:$0xff] }
 0x249   : > { %1588 = vmatpush.bf16.msrb.mxu0 %v2754_v51 }
 0x24b   : > { %v1219_v57 = vpop.f32.mrf.mxu0  ;;  %v1236_v58 = vpop.f32.mrf.mxu1 }
 0x24c   : > { %v1279_v60 = vmul.f32 %v2839_v56, %v1236_v58  ;;  %v2753_v56 = vld [vmem:[%s3500_s11] sm:$0xff]  ;;  %v2755_v57 = vld [vmem:[%s3500_s11 + $0x10] sm:$0xff] }
 0x24d   : > { %1589 = vmatpush.bf16.msrb.mxu0 %v2753_v56 }
 0x24e   : > { %v1283_v61 = vpack.c.bf16 %v1279_v60, %v1279_v60  ;;  %v2759_v60 = vld [vmem:[%s3500_s11 + $0x30] sm:$0xff] }
 0x250   : > { %2553 = vmatmul.msk.bf16.vlgmr.msra.gmra.mxu1 %vm1080_vm1, %v1283_v61 }
 0x251   : > { %1614 = vmatpush.bf16.msra.mxu1 %v2756_v52 }
 0x253   : > { %v1238_v62 = vpop.f32.mrf.mxu1 }
 0x254   : > { %v1189_v63 = vpop.xlane.xlu2 %1188 }
 0x255   : > { %2840 = vrcp.f32 %v1189_v63  ;;  %1615 = vmatpush.bf16.msra.mxu1 %v2755_v57 }
 0x25b   : > { %v2841_v1 = vpop.eup %2840 }
 0x25c   : > { %v1192_v0 = vpop.xlane.xlu2 %1191 }
 0x25d   : > { %2842 = vrcp.f32 %v1192_v0 }
 0x25e   : > { %2844 = vrcp.f32 %v2934_v31 }
 0x263   : > { %v2843_v5 = vpop.eup %2842 }
 0x264   : > { %v2845_v32 = vpop.eup %2844 }
 0x265   : > { %v1255_v2 = vpop.f32.mrf.mxu2  ;;  %v1383_v33 = vmul.f32 32.0, %v2845_v32  ;;  %vm1387_vm3 = vweird.f32 %v2845_v32 }
 0x266   : > { %v1280_v3 = vmul.f32 %v2841_v1, %v1255_v2 }
 0x267   : > { %v1384_v34 = vsub.f32 1.0, %v1383_v33 }
 0x268   : > { %v1284_v4 = vpack.c.bf16 %v1280_v3, %v1280_v3  ;;  %v2820_v3 = vld [vmem:[%s3555_s8] ss:$0 sm:$0xff]  ;;  %s700_s8 = scalar_lea.vmem [#allocation2], %s2432_s3 }
 0x269   : > { %v1385_v35 = vmul.f32 %v2845_v32, %v1384_v34  ;;  %s2342_s4 = sshll.u32 %s700_s8, 4  ;;  %s2343_s4 = int_to_ptr.vmem [resolvable:$true] %s2342_s4 }
 0x26a   : > { %2554 = vmatmul.msk.bf16.vlgmr.msra.gmra.mxu2 %vm1080_vm1, %v1284_v4 }
 0x26b   : > { %v1386_v36 = vadd.f32 %v2845_v32, %v1385_v35  ;;  %1640 = vmatpush.bf16.msra.mxu2 %v2758_v53 }
 0x26d   : > { %v1257_v6 = vpop.f32.mrf.mxu2  ;;  %v1274_v7 = vpop.f32.mrf.mxu3  ;;  %v3247_v37 = vsel %vm1387_vm3, %v2845_v32, %v1386_v36 }
 0x26e   : > { %v1281_v8 = vmul.f32 %v2843_v5, %v1274_v7  ;;  %v2821_v5 = vld [vmem:[%s3556_s9] ss:$0 sm:$0xff]  ;;  %s2344_s9 = sshll.u32 %s2340_s22, 4  ;;  %s2345_s9 = int_to_ptr.hbm [resolvable:$true] %s2344_s9 }
 0x26f   : > { %1641 = vmatpush.bf16.msra.mxu2 %v2757_v59  ;;  %s2884_s24 = sshra.s32 %s2345_s9, 4  ;;  %s2885_s24 = int_to_ptr.hbm [resolvable:$true] %s2884_s24 }
 0x270   : > { %v1285_v9 = vpack.c.bf16 %v1281_v8, %v1281_v8  ;;  %s2886_s30 = scalar_lea.hbm %s2885_s24, 8  ;;  %p2891_p0 = scmp.lt.s32.totalorder %s2885_s24, %s3560_s23 }
 0x271   : > { %p2887_p11 = scmp.ne.s32.totalorder %s2885_s24, %s2886_s30 }
 0x272   : > { %2555 = vmatmul.msk.bf16.vlgmr.msrb.gmra.mxu3 %vm1080_vm1, %v1285_v9 }
 0x273   : > { %1666 = vmatpush.bf16.msrb.mxu3 %v2760_v55  ;;  %p2888_p12 = pnand %p2887_p11, %p3088_p5 }
 0x275   : > { %v1276_v10 = vpop.f32.mrf.mxu3  ;;  %p2889_p13 = pneg %p2888_p12 }
 0x276   : > { %v1418_v10 = vld [vmem:[%s708_s2] sm:$0xff]  ;;  %s2330_s2 = scalar_lea.sflag [#allocation3], %s698_s29 }
 0x277   : > { %1667 = vmatpush.bf16.msrb.mxu3 %v2759_v60 }
 0x2c5   : > { %v1305_v12 = vpop.f32.mrf.mxu0 }
 0x2c6   : > { %v1366_v18 = vsel %vm744_vm0, %v1305_v12, 0.0  ;;  %v1419_v12 = vld [vmem:[%s712_s0] sm:$0xff] }
 0x2cd   : > { %v1307_v13 = vpop.f32.mrf.mxu0  ;;  %v1324_v14 = vpop.f32.mrf.mxu1 }
 0x2ce   : > { %v1367_v17 = vsel %vm744_vm0, %v1324_v14, 0.0  ;;  %v1420_v13 = vpack.c.bf16 %v1418_v10, %v1418_v10  ;;  %v1421_v14 = vpack.c.bf16 %v1419_v12, %v1419_v12 }
 0x2cf   : > { %v1368_v20 = vadd.f32 %v1367_v17, %v1366_v18  ;;  %v2766_v18 = vld [vmem:[%s3501_s12 + $0x28] sm:$0xff] }
 0x2d5   : > { %v1326_v15 = vpop.f32.mrf.mxu1 }
 0x2d6   : > { %v1564_v15 = vunpack.c.l.b16 %v1420_v13 }
 0x2ed   : > { %v1343_v16 = vpop.f32.mrf.mxu2 }
 0x2ee   : > { %v1369_v19 = vsel %vm744_vm0, %v1343_v16, 0.0  ;;  %v1565_v16 = vunpack.c.l.b16 %v1421_v14 }
 0x2ef   : > { %v1370_v21 = vadd.f32 %v1369_v19, %v1368_v20  ;;  %v2762_v19 = vld [vmem:[%s3501_s12 + $0x8] sm:$0xff]  ;;  %v2764_v20 = vld [vmem:[%s3501_s12 + $0x18] sm:$0xff] }
 0x2f0   : > { %v1566_v17 = vpack.c.b16 %v1565_v16, %v1564_v15 }
 0x2f5   : > { %v1345_v22 = vpop.f32.mrf.mxu2  ;;  %v1362_v23 = vpop.f32.mrf.mxu3 }
 0x2f6   : > { %v1371_v25 = vsel %vm744_vm0, %v1362_v23, 0.0  ;;  %v2765_v22 = vld [vmem:[%s3501_s12 + $0x20] sm:$0xff] }
 0x2f7   : > { %v1372_v26 = vadd.f32 %v1371_v25, %v1370_v21  ;;  %v2768_v21 = vld [vmem:[%s3501_s12 + $0x38] sm:$0xff]  ;;  %v2761_v23 = vld [vmem:[%s3501_s12] sm:$0xff]  ;;  %v2767_v25 = vld [vmem:[%s3501_s12 + $0x30] sm:$0xff] }
 0x2f9   : > { %v1377_v27 = vadd.f32 %v2819_v24, %v1372_v26  ;;  %v2763_v24 = vld [vmem:[%s3501_s12 + $0x10] sm:$0xff] }
 0x2fb   : > { %v1378_v28 = vadd.f32 %v1377_v27, %v3139_v11 }
 0x2fd   : > { %v1364_v29 = vpop.f32.mrf.mxu3  ;;  %v1379_v30 = vsel %vm744_vm0, %v1378_v28, 0.0 }
 0x2fe   : > { %1380 = vadd.xlane.f32.xlu2 %v1379_v30 }
 0x371   : > { %v1381_v38 = vpop.xlane.xlu2 %1380 }
 0x372   : > { %v1389_v39 = vmul.f32 %v3247_v37, %v1381_v38 }
 0x374   : > { %v1390_v40 = vsub.f32 %v1378_v28, %v1389_v39 }
 0x376   : > { %v1391_v41 = vmul.f32 %v1390_v40, %v1390_v40 }
 0x378   : > { %v1392_v11 = vsel %vm744_vm0, %v1391_v41, 0.0 }
 0x379   : > { %1393 = vadd.xlane.f32.xlu0 %v1392_v11 }
 0x3ec   : > { %v1394_v50 = vpop.xlane.xlu0 %1393 }
 0x3ed   : > { %v1395_v54 = vmul.f32 %v1394_v50, %v3247_v37 }
 0x3ef   : > { %v1396_v58 = vadd.f32 1e-05, %v1395_v54 }
 0x3f1   : > { %2846 = vrsqrt.f32 %v1396_v58  ;;  %vm1403_vm5 = vweird.f32 %v1396_v58 }
 0x3f7   : > { %v2847_v61 = vpop.eup %2846 }
 0x3f8   : > { %v1398_v62 = vmul.f32 %v2847_v61, %v1396_v58  ;;  %vm1404_vm4 = vweird.f32 %v2847_v61 }
 0x3f9   : > { %vm1405_vm6 = vmor %vm1403_vm5, %vm1404_vm4 }
 0x3fa   : > { %v1399_v63 = vmul.f32 %v2847_v61, %v1398_v62 }
 0x3fc   : > { %v1400_v0 = vmul.f32 0.5, %v1399_v63 }
 0x3fe   : > { %v1401_v1 = vsub.f32 1.5, %v1400_v0 }
 0x400   : > { %v1402_v2 = vmul.f32 %v2847_v61, %v1401_v1 }
 0x402   : > { %v1406_v4 = vsel %vm1405_vm6, %v2847_v61, %v1402_v2 }
 0x403   : > { %v1407_v6 = vmul.f32 %v1406_v4, %v1390_v40 }
 0x405   : > { %v1412_v7 = vmul.f32 %v2820_v3, %v1407_v6 }
 0x407   : > { %v3306_v8 = vadd.f32 %v2821_v5, %v1412_v7 }
 0x409   : > { %v1422_v9 = vpack.c.bf16 %v3306_v8, %v3306_v8 }
 0x40b   : > { %2564 = vmatmul.msk.bf16.vlgmr.msra.gmra.mxu0 %vm744_vm0, %v1422_v9  ;;  %2573 = vmatmul.msk.bf16.vlgmr.msrb.gmra.mxu1 %vm744_vm0, %v1422_v9 }
 0x40c   : > { %2582 = vmatmul.msk.bf16.vlgmr.msrb.gmra.mxu2 %vm744_vm0, %v1422_v9  ;;  %2591 = vmatmul.msk.bf16.vlgmr.msra.gmra.mxu3 %vm744_vm0, %v1422_v9 }
 0x40d   : > { %1768 = vmatpush.bf16.msrb.mxu2 %v2766_v18  ;;  %1716 = vmatpush.bf16.msra.mxu0 %v2762_v19 }
 0x40e   : > { %1742 = vmatpush.bf16.msrb.mxu1 %v2764_v20  ;;  %1794 = vmatpush.bf16.msra.mxu3 %v2768_v21 }
 0x411   : > { %1769 = vmatpush.bf16.msrb.mxu2 %v2765_v22  ;;  %1717 = vmatpush.bf16.msra.mxu0 %v2761_v23 }
 0x412   : > { %1743 = vmatpush.bf16.msrb.mxu1 %v2763_v24  ;;  %1795 = vmatpush.bf16.msra.mxu3 %v2767_v25 }
 0x41b   : > { %2600 = vmatmul.msk.bf16.vlgmr.msrb.gmra.mxu0 %vm744_vm0, %v1566_v17  ;;  %2609 = vmatmul.msk.bf16.vlgmr.msra.gmra.mxu1 %vm744_vm0, %v1566_v17 }
 0x41c   : > { %2618 = vmatmul.msk.bf16.vlgmr.msra.gmra.mxu2 %vm744_vm0, %v1566_v17  ;;  %2627 = vmatmul.msk.bf16.vlgmr.msrb.gmra.mxu3 %vm744_vm0, %v1566_v17 }
 0x42b   : > { %2636 = vmatmul.msk.bf16.vlgmr.msra.gmra.mxu0 %vm744_vm0, %v1566_v17  ;;  %2645 = vmatmul.msk.bf16.vlgmr.msrb.gmra.mxu1 %vm744_vm0, %v1566_v17 }
 0x42c   : > { %2654 = vmatmul.msk.bf16.vlgmr.msrb.gmra.mxu2 %vm744_vm0, %v1566_v17  ;;  %2663 = vmatmul.msk.bf16.vlgmr.msra.gmra.mxu3 %vm744_vm0, %v1566_v17 }
 0x488   : > { %v1463_v26 = vpop.f32.mrf.mxu0  ;;  %v1488_v27 = vpop.f32.mrf.mxu1 }
 0x489   : > { %v1542_v0 = vpack.c.bf16 %v1463_v26, %v1463_v26  ;;  %v1543_v1 = vpack.c.bf16 %v1488_v27, %v1488_v27 }
 0x48f   : > { %v1513_v28 = vpop.f32.mrf.mxu2  ;;  %v1538_v29 = vpop.f32.mrf.mxu3 }
 0x490   : > { %v1465_v30 = vpop.f32.mrf.mxu0  ;;  %v1490_v31 = vpop.f32.mrf.mxu1  ;;  %v1544_v4 = vpack.c.bf16 %v1513_v28, %v1513_v28  ;;  %v1545_v5 = vpack.c.bf16 %v1538_v29, %v1538_v29 }
 0x497   : > { %v1515_v32 = vpop.f32.mrf.mxu2  ;;  %v1540_v33 = vpop.f32.mrf.mxu3 }
 0x498   : > { %v1591_v34 = vpop.f32.mrf.mxu0  ;;  %v1617_v35 = vpop.f32.mrf.mxu1 }
 0x499   : > { %v1674_v36 = vpack.c.bf16 %v1591_v34, %v1591_v34  ;;  %v1676_v38 = vpack.c.bf16 %v1617_v35, %v1617_v35 }
 0x49b   : > { %v1812_v42 = vunpack.c.l.b16 %v1674_v36  ;;  %v1836_v43 = vunpack.c.l.b16 %v1676_v38 }
 0x49f   : > { %v1643_v39 = vpop.f32.mrf.mxu2  ;;  %v1669_v40 = vpop.f32.mrf.mxu3 }
 0x4a0   : > { %v1593_v41 = vpop.f32.mrf.mxu0  ;;  %v1619_v11 = vpop.f32.mrf.mxu1  ;;  %v1678_v50 = vpack.c.bf16 %v1643_v39, %v1643_v39  ;;  %v1680_v51 = vpack.c.bf16 %v1669_v40, %v1669_v40 }
 0x4a1   : > { %v1675_v44 = vpack.c.bf16 %v1593_v41, %v1593_v41  ;;  %v1677_v45 = vpack.c.bf16 %v1619_v11, %v1619_v11 }
 0x4a2   : > { %v1860_v58 = vunpack.c.l.b16 %v1678_v50  ;;  %v1884_v59 = vunpack.c.l.b16 %v1680_v51 }
 0x4a3   : > { %v1813_v46 = vunpack.c.l.b16 %v1675_v44  ;;  %v1837_v47 = vunpack.c.l.b16 %v1677_v45 }
 0x4a5   : > { %v1814_v48 = vpack.c.b16 %v1813_v46, %v1812_v42  ;;  %v1838_v49 = vpack.c.b16 %v1837_v47, %v1836_v43 }
 0x4a7   : > { %v1645_v52 = vpop.f32.mrf.mxu2  ;;  %v1671_v53 = vpop.f32.mrf.mxu3  ;;  %v1819_v54 = vsel %vm1080_vm1, %v1814_v48, 0  ;;  %v1843_v55 = vsel %vm1080_vm1, %v1838_v49, 0 }
 0x4a8   : > { %v1679_v56 = vpack.c.bf16 %v1645_v52, %v1645_v52  ;;  %v1681_v57 = vpack.c.bf16 %v1671_v53, %v1671_v53  ;;  %1828 = vmatpush.bf16.xpose.msrb.mxu0 %v1819_v54  ;;  %1852 = vmatpush.bf16.xpose.msra.mxu1 %v1843_v55  ;;  %v1719_v6 = vpop.f32.mrf.mxu0  ;;  %v1745_v7 = vpop.f32.mrf.mxu1 }
 0x4a9   : > { %v1802_v9 = vpack.c.bf16 %v1719_v6, %v1719_v6  ;;  %v1804_v12 = vpack.c.bf16 %v1745_v7, %v1745_v7 }
 0x4aa   : > { %v1861_v60 = vunpack.c.l.b16 %v1679_v56  ;;  %v1885_v61 = vunpack.c.l.b16 %v1681_v57 }
 0x4ab   : > { %v1953_v14 = vunpack.c.l.b16 %v1802_v9  ;;  %v1975_v17 = vunpack.c.l.b16 %v1804_v12  ;;  %v2047_v9 = vld [vmem:[%s3502_s13] sm:$0xf]  ;;  %v2049_v12 = vld [vmem:[%s3502_s13 + $0x8] sm:$0xf] }
 0x4ac   : > { %v1862_v62 = vpack.c.b16 %v1861_v60, %v1860_v58  ;;  %v1886_v63 = vpack.c.b16 %v1885_v61, %v1884_v59 }
 0x4ae   : > { %v1867_v2 = vsel %vm1080_vm1, %v1862_v62, 0  ;;  %v1891_v3 = vsel %vm1080_vm1, %v1886_v63, 0 }
 0x4af   : > { %1876 = vmatpush.bf16.xpose.msra.mxu2 %v1867_v2  ;;  %1900 = vmatpush.bf16.xpose.msrb.mxu3 %v1891_v3  ;;  %v1771_v10 = vpop.f32.mrf.mxu2  ;;  %v1797_v13 = vpop.f32.mrf.mxu3 }
 0x4b0   : > { %2664 = vmatmul.msk.bf16.vlgmr.msrb.gmra.mxu0 %vm1080_vm1, %v1542_v0  ;;  %2665 = vmatmul.msk.bf16.vlgmr.msra.gmra.mxu1 %vm1080_vm1, %v1543_v1  ;;  %v1721_v15 = vpop.f32.mrf.mxu0  ;;  %v1747_v16 = vpop.f32.mrf.mxu1  ;;  %v1806_v20 = vpack.c.bf16 %v1771_v10, %v1771_v10  ;;  %v1808_v23 = vpack.c.bf16 %v1797_v13, %v1797_v13  ;;  %v2055_v10 = vsel %vm1204_vm2, %v2047_v9, 0  ;;  %v2093_v13 = vsel %vm1204_vm2, %v2049_v12, 0 }
 0x4b1   : > { %v1803_v18 = vpack.c.bf16 %v1721_v15, %v1721_v15  ;;  %v1805_v19 = vpack.c.bf16 %v1747_v16, %v1747_v16  ;;  %v2048_v16 = vld [vmem:[%s3502_s13 + $0x4] sm:$0xf] }
 0x4b2   : > { %v1997_v27 = vunpack.c.l.b16 %v1806_v20  ;;  %v2019_v31 = vunpack.c.l.b16 %v1808_v23 }
 0x4b3   : > { %v1954_v21 = vunpack.c.l.b16 %v1803_v18  ;;  %v1976_v22 = vunpack.c.l.b16 %v1805_v19 }
 0x4b5   : > { %v1955_v25 = vpack.c.b16 %v1954_v21, %v1953_v14  ;;  %v1977_v26 = vpack.c.b16 %v1976_v22, %v1975_v17  ;;  %v2050_v14 = vld [vmem:[%s3502_s13 + $0xc] sm:$0xf]  ;;  %v2074_v17 = vsel %vm1204_vm2, %v2048_v16, 0  ;;  %v2823_v16 = vld [vmem:[%s3504_s15] ss:$0 sm:$0xff] }
 0x4b6   : > { %2666 = vmatmul.msk.bf16.vlgmr.msra.gmra.mxu2 %vm1080_vm1, %v1544_v4  ;;  %2667 = vmatmul.msk.bf16.vlgmr.msrb.gmra.mxu3 %vm1080_vm1, %v1545_v5  ;;  %v2112_v15 = vsel %vm1204_vm2, %v2050_v14, 0  ;;  %v2822_v14 = vld [vmem:[%s3503_s14] ss:$0 sm:$0xff] }
 0x4b7   : > { %v1773_v24 = vpop.f32.mrf.mxu2  ;;  %v1799_v30 = vpop.f32.mrf.mxu3  ;;  %1989 = vmatpush.bf16.msrb.mxu1 %v1977_v26  ;;  %1967 = vmatpush.bf16.msra.mxu0 %v1955_v25 }
 0x4b8   : > { %v1807_v28 = vpack.c.bf16 %v1773_v24, %v1773_v24  ;;  %v1809_v32 = vpack.c.bf16 %v1799_v30, %v1799_v30 }
 0x4ba   : > { %v1998_v29 = vunpack.c.l.b16 %v1807_v28  ;;  %v2020_v34 = vunpack.c.l.b16 %v1809_v32 }
 0x4bb   : > { %2064 = vmatpush.bf16.msrb.mxu0 %v2055_v10  ;;  %2083 = vmatpush.bf16.msra.mxu1 %v2074_v17 }
 0x4bc   : > { %v1999_v33 = vpack.c.b16 %v1998_v29, %v1997_v27  ;;  %v2021_v35 = vpack.c.b16 %v2020_v34, %v2019_v31 }
 0x4be   : > { %2011 = vmatpush.bf16.msrb.mxu2 %v1999_v33  ;;  %2033 = vmatpush.bf16.msra.mxu3 %v2021_v35 }
 0x4c2   : > { %2102 = vmatpush.bf16.msra.mxu2 %v2093_v13  ;;  %2121 = vmatpush.bf16.msrb.mxu3 %v2112_v15 }
 0x52d   : > { %v1830_v36 = vpop.f32.mrf.mxu0  ;;  %v1854_v38 = vpop.f32.mrf.mxu1 }
 0x52e   : > { %v1907_v39 = vsel %vm1906_vm7, %v1830_v36, -inf  ;;  %v1910_v47 = vsel %vm1906_vm7, %v1854_v38, -inf }
 0x52f   : > { %1908 = vmax.xlane.f32.xlu0 %v1907_v39 }
 0x535   : > { %v1832_v40 = vpop.f32.mrf.mxu0  ;;  %v1856_v41 = vpop.f32.mrf.mxu1 }
 0x539   : > { %v1878_v11 = vpop.f32.mrf.mxu2  ;;  %v1902_v42 = vpop.f32.mrf.mxu3 }
 0x53a   : > { %v1916_v43 = vsel %vm1906_vm7, %v1902_v42, -inf  ;;  %v1913_v44 = vsel %vm1906_vm7, %v1878_v11, -inf }
 0x53b   : > { %1917 = vmax.xlane.f32.xlu2 %v1916_v43  ;;  %1914 = vmax.xlane.f32.xlu1 %v1913_v44 }
 0x541   : > { %v1880_v45 = vpop.f32.mrf.mxu2  ;;  %v1904_v46 = vpop.f32.mrf.mxu3 }
 0x543   : > { %1911 = vmax.xlane.f32.xlu1 %v1910_v47 }
 0x5a2   : > { %v1909_v48 = vpop.xlane.xlu0 %1908 }
 0x5a3   : > { %v1919_v49 = vsub.f32 %v1830_v36, %v1909_v48 }
 0x5a5   : > { %v1923_v50 = vmul.f32 1.442695, %v1919_v49 }
 0x5a7   : > { %2848 = vpow2.f32 %v1923_v50 }
 0x5ad   : > { %v2849_v51 = vpop.eup %2848 }
 0x5ae   : > { %v1947_v52 = vpack.c.bf16 %v2849_v51, %v2849_v51  ;;  %v1918_v53 = vpop.xlane.xlu2 %1917  ;;  %v1915_v54 = vpop.xlane.xlu1 %1914  ;;  %v1931_v55 = vsel %vm1906_vm7, %v2849_v51, 0.0 }
 0x5af   : > { %v1922_v56 = vsub.f32 %v1902_v42, %v1918_v53  ;;  %v1921_v57 = vsub.f32 %v1878_v11, %v1915_v54  ;;  %1932 = vadd.xlane.f32.xlu1 %v1931_v55 }
 0x5b0   : > { %2668 = vmatmul.msk.bf16.vlgmr.msra.gmra.mxu0 %vm1906_vm7, %v1947_v52 }
 0x5b1   : > { %v1929_v58 = vmul.f32 1.442695, %v1922_v56  ;;  %v1927_v59 = vmul.f32 1.442695, %v1921_v57 }
 0x5b3   : > { %2850 = vpow2.f32 %v1929_v58 }
 0x5b4   : > { %2852 = vpow2.f32 %v1927_v59 }
 0x5b6   : > { %v1912_v60 = vpop.xlane.xlu1 %1911 }
 0x5b7   : > { %v1920_v61 = vsub.f32 %v1854_v38, %v1912_v60 }
 0x5b9   : > { %v2851_v62 = vpop.eup %2850  ;;  %v1925_v63 = vmul.f32 1.442695, %v1920_v61 }
 0x5ba   : > { %v2853_v0 = vpop.eup %2852  ;;  %v1950_v1 = vpack.c.bf16 %v2851_v62, %v2851_v62  ;;  %v1940_v2 = vsel %vm1906_vm7, %v2851_v62, 0.0 }
 0x5bb   : > { %v1949_v3 = vpack.c.bf16 %v2853_v0, %v2853_v0  ;;  %2854 = vpow2.f32 %v1925_v63  ;;  %v1937_v4 = vsel %vm1906_vm7, %v2853_v0, 0.0  ;;  %1941 = vadd.xlane.f32.xlu0 %v1940_v2  ;;  %v2770_v0 = vld [vmem:[%s3505_s16 + $0x8] sm:$0xff] }
 0x5bc   : > { %1938 = vadd.xlane.f32.xlu2 %v1937_v4  ;;  %2671 = vmatmul.msk.bf16.vlgmr.msra.gmra.mxu3 %vm1906_vm7, %v1950_v1  ;;  %v2778_v1 = vld [vmem:[%s3507_s18 + $0x38] sm:$0xff]  ;;  %v2777_v4 = vld [vmem:[%s3507_s18 + $0x30] sm:$0xff] }
 0x5bd   : > { %2670 = vmatmul.msk.bf16.vlgmr.msrb.gmra.mxu2 %vm1906_vm7, %v1949_v3  ;;  %2197 = vmatpush.bf16.msra.mxu0 %v2770_v0 }
 0x5c1   : > { %v2855_v5 = vpop.eup %2854 }
 0x5c2   : > { %v1948_v6 = vpack.c.bf16 %v2855_v5, %v2855_v5  ;;  %v1934_v7 = vsel %vm1906_vm7, %v2855_v5, 0.0 }
 0x5c4   : > { %1935 = vadd.xlane.f32.xlu2 %v1934_v7  ;;  %2669 = vmatmul.msk.bf16.vlgmr.msrb.gmra.mxu1 %vm1906_vm7, %v1948_v6 }
 0x5c5   : > { %2282 = vmatpush.bf16.msrb.mxu1 %v2778_v1 }
 0x5c9   : > { %2283 = vmatpush.bf16.msrb.mxu1 %v2777_v4 }
 0x622   : > { %v1933_v18 = vpop.xlane.xlu1 %1932 }
 0x623   : > { %2856 = vrcp.f32 %v1933_v18 }
 0x629   : > { %v2857_v19 = vpop.eup %2856 }
 0x62d   : > { %v1969_v20 = vpop.f32.mrf.mxu0 }
 0x62e   : > { %v2039_v21 = vmul.f32 %v2857_v19, %v1969_v20  ;;  %v1942_v25 = vpop.xlane.xlu0 %1941 }
 0x62f   : > { %v1939_v22 = vpop.xlane.xlu2 %1938  ;;  %2858 = vrcp.f32 %v1942_v25  ;;  %v2772_v25 = vld [vmem:[%s3507_s18 + $0x8] sm:$0xff] }
 0x630   : > { %v2043_v23 = vpack.c.bf16 %v2039_v21, %v2039_v21  ;;  %2860 = vrcp.f32 %v1939_v22  ;;  %v2776_v21 = vld [vmem:[%s3507_s18 + $0x28] sm:$0xff]  ;;  %v2775_v22 = vld [vmem:[%s3507_s18 + $0x20] sm:$0xff] }
 0x631   : > { %2284 = vmatpush.bf16.msrb.mxu1 %v2776_v21 }
 0x632   : > { %2672 = vmatmul.msk.bf16.vlgmr.msrb.gmra.mxu0 %vm1080_vm1, %v2043_v23  ;;  %v2774_v23 = vld [vmem:[%s3507_s18 + $0x18] sm:$0xff] }
 0x635   : > { %v1971_v24 = vpop.f32.mrf.mxu0  ;;  %v2859_v27 = vpop.eup %2858  ;;  %2285 = vmatpush.bf16.msrb.mxu1 %v2775_v22 }
 0x636   : > { %v2861_v29 = vpop.eup %2860  ;;  %v2773_v24 = vld [vmem:[%s3507_s18 + $0x10] sm:$0xff] }
 0x637   : > { %v1936_v26 = vpop.xlane.xlu2 %1935 }
 0x638   : > { %2862 = vrcp.f32 %v1936_v26  ;;  %v2771_v26 = vld [vmem:[%s3507_s18] sm:$0xff] }
 0x639   : > { %2286 = vmatpush.bf16.msrb.mxu1 %v2774_v23 }
 0x63d   : > { %2287 = vmatpush.bf16.msrb.mxu1 %v2773_v24 }
 0x63e   : > { %v2863_v32 = vpop.eup %2862 }
 0x63f   : > { %v2035_v28 = vpop.f32.mrf.mxu3 }
 0x640   : > { %v2013_v30 = vpop.f32.mrf.mxu2  ;;  %v2042_v31 = vmul.f32 %v2859_v27, %v2035_v28  ;;  %v2824_v27 = vld [vmem:[%s3506_s17] ss:$0 sm:$0xff] }
 0x641   : > { %v2041_v33 = vmul.f32 %v2861_v29, %v2013_v30  ;;  %v1991_v34 = vpop.f32.mrf.mxu1  ;;  %2288 = vmatpush.bf16.msrb.mxu1 %v2772_v25 }
 0x642   : > { %v2046_v35 = vpack.c.bf16 %v2042_v31, %v2042_v31  ;;  %v2040_v36 = vmul.f32 %v2863_v32, %v1991_v34 }
 0x643   : > { %v2045_v38 = vpack.c.bf16 %v2041_v33, %v2041_v33 }
 0x644   : > { %v2044_v39 = vpack.c.bf16 %v2040_v36, %v2040_v36  ;;  %2675 = vmatmul.msk.bf16.vlgmr.msrb.gmra.mxu3 %vm1080_vm1, %v2046_v35 }
 0x645   : > { %2674 = vmatmul.msk.bf16.vlgmr.msra.gmra.mxu2 %vm1080_vm1, %v2045_v38  ;;  %2289 = vmatpush.bf16.msrb.mxu1 %v2771_v26 }
 0x646   : > { %2673 = vmatmul.msk.bf16.vlgmr.msra.gmra.mxu1 %vm1080_vm1, %v2044_v39 }
 0x647   : > { %v2037_v40 = vpop.f32.mrf.mxu3 }
 0x648   : > { %v2015_v41 = vpop.f32.mrf.mxu2 }
 0x649   : > { %v1993_v11 = vpop.f32.mrf.mxu1 }
 0x64a   : > { %v2825_v11 = vld [vmem:[%s3508_s19] ss:$0 sm:$0xff] }
 0x6af   : > { %v2066_v42 = vpop.f32.mrf.mxu0 }
 0x6b0   : > { %v2127_v46 = vsel %vm744_vm0, %v2066_v42, 0.0 }
 0x6b7   : > { %v2068_v43 = vpop.f32.mrf.mxu0 }
 0x6c3   : > { %v2085_v44 = vpop.f32.mrf.mxu1 }
 0x6c4   : > { %v2128_v45 = vsel %vm744_vm0, %v2085_v44, 0.0 }
 0x6c5   : > { %v2129_v48 = vadd.f32 %v2128_v45, %v2127_v46 }
 0x6c7   : > { %v2123_v47 = vpop.f32.mrf.mxu3 }
 0x6c8   : > { %v2104_v49 = vpop.f32.mrf.mxu2  ;;  %v2132_v52 = vsel %vm744_vm0, %v2123_v47, 0.0 }
 0x6c9   : > { %v2130_v50 = vsel %vm744_vm0, %v2104_v49, 0.0 }
 0x6ca   : > { %v2131_v51 = vadd.f32 %v2130_v50, %v2129_v48 }
 0x6cb   : > { %v2087_v53 = vpop.f32.mrf.mxu1 }
 0x6cc   : > { %v2133_v54 = vadd.f32 %v2132_v52, %v2131_v51 }
 0x6ce   : > { %v2134_v55 = vadd.f32 %v2133_v54, %v3306_v8  ;;  %v2769_v8 = vld [vmem:[%s3505_s16] sm:$0xff] }
 0x6cf   : > { %v2125_v56 = vpop.f32.mrf.mxu3  ;;  %2198 = vmatpush.bf16.msra.mxu0 %v2769_v8 }
 0x6d0   : > { %v2106_v57 = vpop.f32.mrf.mxu2  ;;  %v2135_v58 = vsel %vm744_vm0, %v2134_v55, 0.0 }
 0x6d1   : > { %2136 = vadd.xlane.f32.xlu0 %v2135_v58 }
 0x744   : > { %v2137_v59 = vpop.xlane.xlu0 %2136 }
 0x745   : > { %v2138_v60 = vmul.f32 %v2137_v59, %v3247_v37 }
 0x747   : > { %v2139_v61 = vsub.f32 %v2134_v55, %v2138_v60 }
 0x749   : > { %v2140_v62 = vmul.f32 %v2139_v61, %v2139_v61 }
 0x74b   : > { %v2141_v63 = vsel %vm744_vm0, %v2140_v62, 0.0 }
 0x74c   : > { %2142 = vadd.xlane.f32.xlu1 %v2141_v63  ;;  %v2827_v63 = vld [vmem:[%s3562_s7] ss:$0 sm:$0xff]  ;;  %s2890_s7 = scalar_lea.hbm %s3560_s23, 16 }
 0x74d   : > { %p2892_p1 = scmp.lt.s32.totalorder %s2890_s7, %s2886_s30 }
 0x74f   : > { %p2893_p2 = por %p2892_p1, %p2891_p0 }
 0x751   : > { %p2894_p3 = pnand %p2893_p2, %p2889_p13 }
 0x7bf   : > { %v2143_v2 = vpop.xlane.xlu1 %2142 }
 0x7c0   : > { %v2144_v3 = vmul.f32 %v2143_v2, %v3247_v37 }
 0x7c2   : > { %v2145_v5 = vadd.f32 1e-05, %v2144_v3 }
 0x7c4   : > { %2864 = vrsqrt.f32 %v2145_v5  ;;  %vm2152_vm9 = vweird.f32 %v2145_v5 }
 0x7ca   : > { %v2865_v6 = vpop.eup %2864 }
 0x7cb   : > { %v2147_v7 = vmul.f32 %v2865_v6, %v2145_v5  ;;  %vm2153_vm8 = vweird.f32 %v2865_v6 }
 0x7cc   : > { %vm2154_vm10 = vmor %vm2152_vm9, %vm2153_vm8 }
 0x7cd   : > { %v2148_v9 = vmul.f32 %v2865_v6, %v2147_v7 }
 0x7cf   : > { %v2149_v10 = vmul.f32 0.5, %v2148_v9 }
 0x7d1   : > { %v2150_v12 = vsub.f32 1.5, %v2149_v10 }
 0x7d3   : > { %v2151_v13 = vmul.f32 %v2865_v6, %v2150_v12 }
 0x7d5   : > { %v2155_v15 = vsel %vm2154_vm10, %v2865_v6, %v2151_v13 }
 0x7d6   : > { %v2156_v17 = vmul.f32 %v2155_v15, %v2139_v61  ;;  %v2826_v61 = vld [vmem:[%s3559_s1] ss:$0 sm:$0xff] }
 0x7d8   : > { %v2161_v18 = vmul.f32 %v2822_v14, %v2156_v17 }
 0x7da   : > { %v2166_v19 = vadd.f32 %v2823_v16, %v2161_v18 }
 0x7dc   : > { %v2167_v20 = vpack.c.bf16 %v2166_v19, %v2166_v19 }
 0x7de   : > { %2684 = vmatmul.msk.bf16.vlgmr.msra.gmra.mxu0 %vm744_vm0, %v2167_v20 }
 0x85b   : > { %v2200_v28 = vpop.f32.mrf.mxu0 }
 0x85c   : > { %v2201_v29 = vadd.f32 %v2824_v27, %v2200_v28 }
 0x85e   : > { %v2205_v30 = vmul.f32 0.044715, %v2201_v29  ;;  %v2204_v38 = vmul.f32 0.5, %v2201_v29 }
 0x860   : > { %v2206_v31 = vmul.f32 %v2205_v30, %v2201_v29 }
 0x862   : > { %v2207_v32 = vmul.f32 %v2206_v31, %v2201_v29 }
 0x863   : > { %v2202_v33 = vpop.f32.mrf.mxu0 }
 0x864   : > { %v2208_v34 = vadd.f32 %v2207_v32, %v2201_v29 }
 0x866   : > { %v2209_v35 = vmul.f32 0.7978846, %v2208_v34 }
 0x868   : > { %2866 = vtanh.f32 %v2209_v35 }
 0x86e   : > { %v2867_v36 = vpop.eup %2866 }
 0x86f   : > { %v2211_v39 = vadd.f32 1.0, %v2867_v36 }
 0x871   : > { %v2212_v40 = vmul.f32 %v2211_v39, %v2204_v38 }
 0x873   : > { %v2213_v41 = vpack.c.bf16 %v2212_v40, %v2212_v40 }
 0x875   : > { %2290 = vmatmul.bf16.vlgmr.msrb.gmra.mxu1 %v2213_v41 }
 0x8f2   : > { %v2291_v42 = vpop.f32.mrf.mxu1 }
 0x8f3   : > { %v2292_v43 = vadd.f32 %v2825_v11, %v2291_v42 }
 0x8f5   : > { %v2295_v44 = vadd.f32 %v2292_v43, %v2166_v19 }
 0x8f7   : > { %v2296_v45 = vsel %vm744_vm0, %v2295_v44, 0.0 }
 0x8f8   : > { %2297 = vadd.xlane.f32.xlu2 %v2296_v45 }
 0x8fa   : > { %v2293_v46 = vpop.f32.mrf.mxu1 }
 0x96b   : > { %v2298_v47 = vpop.xlane.xlu2 %2297 }
 0x96c   : > { %v2299_v48 = vmul.f32 %v2298_v47, %v3247_v37 }
 0x96e   : > { %v2300_v49 = vsub.f32 %v2295_v44, %v2299_v48 }
 0x970   : > { %v2301_v50 = vmul.f32 %v2300_v49, %v2300_v49 }
 0x972   : > { %v2302_v51 = vsel %vm744_vm0, %v2301_v50, 0.0 }
 0x973   : > { %2303 = vadd.xlane.f32.xlu0 %v2302_v51 }
 0x9e6   : > { %v2304_v52 = vpop.xlane.xlu0 %2303 }
 0x9e7   : > { %v2305_v53 = vmul.f32 %v2304_v52, %v3247_v37 }
 0x9e9   : > { %v2306_v54 = vadd.f32 1e-05, %v2305_v53 }
 0x9eb   : > { %2868 = vrsqrt.f32 %v2306_v54  ;;  %vm2313_vm12 = vweird.f32 %v2306_v54 }
 0x9f1   : > { %v2869_v55 = vpop.eup %2868 }
 0x9f2   : > { %v2308_v56 = vmul.f32 %v2869_v55, %v2306_v54  ;;  %vm2314_vm11 = vweird.f32 %v2869_v55 }
 0x9f3   : > { %vm2315_vm13 = vmor %vm2313_vm12, %vm2314_vm11 }
 0x9f4   : > { %v2309_v57 = vmul.f32 %v2869_v55, %v2308_v56 }
 0x9f6   : > { %v2310_v58 = vmul.f32 0.5, %v2309_v57 }
 0x9f8   : > { %v2311_v59 = vsub.f32 1.5, %v2310_v58 }
 0x9fa   : > { %v2312_v60 = vmul.f32 %v2869_v55, %v2311_v59 }
 0x9fc   : > { %v2316_v37 = vsel %vm2315_vm13, %v2869_v55, %v2312_v60 }
 0x9fd   : > { %v2317_v62 = vmul.f32 %v2316_v37, %v2300_v49 }
 0x9ff   : > { %v2322_v0 = vmul.f32 %v2826_v61, %v2317_v62 }
 0xa01   : > { %v2327_v8 = vadd.f32 %v2827_v63, %v2322_v0 }
 0xa03   : > { %2328 = vst.msk [vmem:[%s700_s8] sm:$0xff] %vm744_vm0, %v2327_v8 }
 0xa04   : > { %2897 = shalt.err (!%p2894_p3)
}
 0xa05   : > { %2779 = dma.vmem_to_hbm [thread:$0]  (%p3088_p5), %s2343_s4, 128, %s2345_s9, %s2330_s2  }
 0xa06 PF: > { %s3563_s8 = sld [smem:[#allocation7_spill]] }
 0xa07   : > { %s3564_s29 = sld [smem:[#allocation5_spill]] }
 0xa0c   : > { %p2785_p4 = scmp.ge.s32.totalorder %s3563_s8, 2 }
 0xa0d   : > { %s2356_s22 = sand.u32 1, %s3564_s29  }
 0xa0e   : > { %p2782_p7 = pnand %p2785_p4, %p3092_p6  ;;  %s2357_s20 = scalar_lea.sflag [#allocation3], %s2356_s22 }
 0xa10   : > { %p2783_p8 = pneg %p2782_p7 }
 0xa12   : > { %2915 = dma.done.wait (%p2783_p8), %s2357_s20, 128  }
 0xa13   : > { %2917 = vsyncadd (%p2783_p8), %s2357_s20, 4294967168  ;;  %s3566_s30 = sld [smem:[#allocation8_spill]]  ;;  %s3569_s3 = smov %s2924_s28 }
 0xa14   : > { %s3567_s24 = sld [smem:[#allocation6_spill]] }
 0xa15   : > { %s3568_s29 = sld [smem:[#allocation9_spill]] }
 0xa19   : > { %p32_p9 = scmp.ge.s32.totalorder %s3566_s30, 4  }
 0xa1a   : > { %s3570_s28 = smov %s3567_s24 }
 0xa1b   :  { %34 = sbr.rel (!%p32_p9) target bundleno = 17 (0x11), region = 149 }
 0xa20   :  { %2363 = vsyncpa [#allocation3], 1 }
 0xa21   :  { %2365 = vsyncpa [#allocation3 + $0x1], 1 }

</bundles_post_ra>
